<compile_context>
chip_gen: v5e
topology: v5e:2x2
jax: 0.10.0
libtpu: 0.0.40
codegen_flags: <defaults>
</compile_context>

<pallas_src>
import functools
import math

import jax
import jax.numpy as jnp
from jax import lax
from jax.experimental import pallas as pl
from jax.experimental.pallas import tpu as pltpu

NEG_INF = -1000000000.0   # matches masked_fill(mask == 0, -1e9) in the reference
_LANE = 128
_SUBLANE = 8


def _round_up(x, m):
    return (x + m - 1) // m * m


# --------------------------------- kernel -------------------------------------

def _mha_kernel(*refs, h, d_k, tq, compute_dtype, exp_dtype, has_mask):
    if has_mask:
        (q_ref, k_ref, v_ref, mask_ref,
         wq_ref, bq_ref, wk_ref, bk_ref, wv_ref, bv_ref,
         wo_ref, bo_ref, out_ref) = refs
    else:
        (q_ref, k_ref, v_ref,
         wq_ref, bq_ref, wk_ref, bk_ref, wv_ref, bv_ref,
         wo_ref, bo_ref, out_ref) = refs
        mask_ref = None

    bb, S, Dp = q_ref.shape

    def project(x, w_ref, b_ref):
        # Head-major projection: h matmuls written straight into a [h, rows, d_k]
        # stack. Weights were laid out [h, Dp, d_k] host-side, so no transpose /
        # relayout of activations is needed in the hot path.
        cols = [(jnp.dot(x, w_ref[i], preferred_element_type=jnp.float32)
                 + b_ref[i]).astype(compute_dtype)
                for i in range(h)]
        return jnp.stack(cols, axis=0)                       # [h, rows, d_k]

    # K / V projections once per batch block (shared by every q chunk).
    x_k = k_ref[...].reshape(bb * S, Dp).astype(compute_dtype)
    x_v = v_ref[...].reshape(bb * S, Dp).astype(compute_dtype)
    kh = project(x_k, wk_ref, bk_ref).reshape(h * bb, S, d_k)
    vh = project(x_v, wv_ref, bv_ref).reshape(h * bb, S, d_k)

    wo_all = wo_ref[...]                                     # [h, d_k, Dp]
    bo_vec = bo_ref[...]                                     # [1, Dp] f32

    def q_chunk_step(q0):
        # Project this chunk's query rows (1/sqrt(d_k) already folded into Wq/bq).
        x_q = q_ref[:, pl.ds(q0, tq), :].reshape(bb * tq, Dp).astype(compute_dtype)
        qh = project(x_q, wq_ref, bq_ref).reshape(h * bb, tq, d_k)

        # All heads & batches in one batched MXU matmul.
        # TODO(synk): if the bundle dump shows a per-(head,batch) vxpose feeding
        # this A @ B^T contraction, emit K pre-transposed instead.
        s = jnp.einsum("bqd,bkd->bqk", qh, kh,
                       preferred_element_type=jnp.float32)   # [h*bb, tq, S] f32

        if has_mask:
            m_i = mask_ref[:, pl.ds(q0, tq), :].astype(jnp.int32)          # [bb, tq, S]
            bias = jnp.where(m_i == 0, NEG_INF, 0.0).astype(jnp.float32)   # one select
            s = (s.reshape(h, bb, tq, S) + bias[None]).reshape(h * bb, tq, S)

        # Softmax: stats in f32; exp in bf16 on v6e/v7x (exp_dtype), f32 otherwise.
        s_max = jnp.max(s, axis=-1, keepdims=True)
        p = jnp.exp((s - s_max).astype(exp_dtype))
        denom = jnp.sum(p, axis=-1, keepdims=True, dtype=jnp.float32)
        r = pl.reciprocal(denom, approx=True)                # EUP slot
        if exp_dtype == jnp.float32:
            r = r * (2.0 - denom * r)                        # Newton step (f32 path only)

        # P @ V, then normalise the (much smaller) context instead of P itself.
        ctx = jnp.einsum("bqk,bkd->bqd", p.astype(compute_dtype), vh,
                         preferred_element_type=jnp.float32) * r           # [h*bb, tq, d_k]

        # Output projection folded per head: sum_h ctx_h @ Wo_h (no merge relayout).
        ctx_h = ctx.reshape(h, bb * tq, d_k).astype(compute_dtype)
        outc = lax.dot_general(ctx_h, wo_all,
                               (((2,), (1,)), ((0,), (0,))),
                               preferred_element_type=jnp.float32)          # [h, bb*tq, Dp]
        outc = jnp.sum(outc, axis=0) + bo_vec                               # [bb*tq, Dp] f32

        # Lane-dense store: Dp is a multiple of 128.
        out_ref[:, pl.ds(q0, tq), :] = outc.reshape(bb, tq, Dp).astype(out_ref.dtype)
        # TODO(synk): dropout on p_attn skipped (eval-mode identity).

    num_chunks = S // tq
    if num_chunks == 1:
        q_chunk_step(0)
    else:
        # q-tiled path: bounds live scores at [h*bb, tq, S].
        def body(ci, carry):
            q_chunk_step(pl.multiple_of(ci * tq, _SUBLANE))
            return carry
        lax.fori_loop(0, num_chunks, body, 0)


# -------------------------------- sizing helpers --------------------------------

def _vmem_limit_bytes():
    # Generation-aware budget: ~60% of physical VMEM (~38 MiB on v7x's 64 MiB,
    # ~76 MiB on v5e/v6e's 128 MiB), capped at 96 MiB.
    try:
        cap = int(pltpu.get_tpu_info().vmem_capacity_bytes)
    except Exception:
        cap = 64 * 1024 * 1024
    return max(16 * 1024 * 1024, min(96 * 1024 * 1024, (cap * 3) // 5))


def _default_exp_dtype(compute_dtype):
    # bf16 exp only where the EUP/VPU have bf16 datapaths (v6e / v7x); f32 on v5e.
    if compute_dtype != jnp.bfloat16:
        return jnp.float32
    try:
        kind = jax.devices()[0].device_kind.lower()
    except Exception:
        return jnp.float32
    return jnp.bfloat16 if any(t in kind for t in ("v6", "v7", "7x")) else jnp.float32


def _pick_q_chunk(S, q_chunk):
    if q_chunk is not None:
        tq = int(q_chunk)
        if S % tq != 0 or (tq % _SUBLANE != 0 and tq != S):
            raise ValueError("q_chunk must divide seq_len and be a multiple of 8")
        return tq
    if S <= 512:
        return S
    for tq in range(512, _SUBLANE - 1, -_SUBLANE):
        if S % tq == 0:
            return tq
    return S


def _pick_b_blk(B, S, Dp, h, d_k, tq, vmem_limit):
    # Largest divisor of B that (a) leaves >= 2 grid steps (pipelining + megacore),
    # (b) keeps ~<=512 projection rows per step, (c) keeps live attention
    # intermediates inside a slice of the VMEM budget.
    budget = vmem_limit // 3
    row_target = max(1, 512 // max(S, 1))
    best = 1
    for cand in range(1, B + 1):
        if B % cand:
            continue
        if B >= 2 and (B // cand) < 2:
            continue
        live = (h * cand * tq * S * 12            # f32 scores + exp/p copies
                + 2 * h * cand * S * d_k * 4      # K/V head stacks
                + 2 * cand * S * Dp * 4)          # x / out tiles
        if live > budget:
            continue
        if cand <= row_target:
            best = cand
    return best


# -------------------------------- wrapper --------------------------------------

def _mha_forward(query, key, value, mask, params, h, compute_dtype, exp_dtype, q_chunk):
    query = jnp.asarray(query, jnp.float32)
    key = jnp.asarray(key, jnp.float32)
    value = jnp.asarray(value, jnp.float32)
    B, S, D = query.shape
    if D % h != 0:
        raise ValueError("d_model must be divisible by h")
    if S % _SUBLANE != 0:
        # TODO(synk): pad seq_len (and mask) to a multiple of 8 instead of raising.
        raise ValueError("seq_len must be a multiple of 8")
    d_k = D // h
    exp_dtype = exp_dtype if exp_dtype is not None else _default_exp_dtype(compute_dtype)

    # Lane-dense activations/stores: pad d_model up to a multiple of 128.
    # At real model sizes (D % 128 == 0) this is a no-op.
    Dp = max(_LANE, _round_up(D, _LANE))
    pad = Dp - D

    (wq, bq), (wk, bk), (wv, bv), (wo, bo) = params
    scale = 1.0 / math.sqrt(d_k)

    # One-time layout work (head-major weights, dtype cast, padding).  The whole
    # wrapper is jitted so this fuses; for repeated calls it can be hoisted since
    # it depends only on the parameters.
    def prep_in_proj(w, b, s):
        w = jnp.asarray(w, jnp.float32) * s                  # nn.Linear [out, in]
        w = w.reshape(h, d_k, D).transpose(0, 2, 1)          # -> [h, in(D), d_k]
        if pad:
            w = jnp.pad(w, ((0, 0), (0, pad), (0, 0)))
        b = (jnp.asarray(b, jnp.float32) * s).reshape(h, 1, d_k)
        return w.astype(compute_dtype), b

    def prep_out_proj(w, b):
        w = jnp.asarray(w, jnp.float32).T.reshape(h, d_k, D)  # [in, out] -> [h, d_k, out]
        b = jnp.asarray(b, jnp.float32).reshape(1, D)
        if pad:
            w = jnp.pad(w, ((0, 0), (0, 0), (0, pad)))
            b = jnp.pad(b, ((0, 0), (0, pad)))
        return w.astype(compute_dtype), b

    wq_h, bq_h = prep_in_proj(wq, bq, scale)   # 1/sqrt(d_k) folded into Wq / bq
    wk_h, bk_h = prep_in_proj(wk, bk, 1.0)
    wv_h, bv_h = prep_in_proj(wv, bv, 1.0)
    wo_h, bo_p = prep_out_proj(wo, bo)

    def prep_x(x):
        if pad:
            x = jnp.pad(x, ((0, 0), (0, 0), (0, pad)))
        return x.astype(compute_dtype)                       # halves activation DMA for bf16

    q_p, k_p, v_p = prep_x(query), prep_x(key), prep_x(value)

    has_mask = mask is not None
    if has_mask:
        mask = jnp.asarray(mask)
        if mask.ndim == 3 and mask.shape[1] == 1 and S != 1:
            mask = jnp.broadcast_to(mask, (B, S, S))         # [B,1,S] -> [B,S,S]
        mask_i8 = (mask != 0).astype(jnp.int8)               # 4x less DMA than f32
    else:
        mask_i8 = None                                       # specialised: no mask input

    tq = _pick_q_chunk(S, q_chunk)
    vmem_limit = _vmem_limit_bytes()
    b_blk = _pick_b_blk(B, S, Dp, h, d_k, tq, vmem_limit)
    grid = (B // b_blk,)

    x_spec = pl.BlockSpec((b_blk, S, Dp), lambda b: (b, 0, 0))
    m_spec = pl.BlockSpec((b_blk, S, S), lambda b: (b, 0, 0))
    # TODO(synk): for large D mark these constant-index weight specs single-
    # buffered (pipeline_mode=pl.Buffered(1)) to cut double-buffer VMEM waste.
    w_spec = pl.BlockSpec((h, Dp, d_k), lambda b: (0, 0, 0))
    b_spec = pl.BlockSpec((h, 1, d_k), lambda b: (0, 0, 0))
    wo_spec = pl.BlockSpec((h, d_k, Dp), lambda b: (0, 0, 0))
    bo_spec = pl.BlockSpec((1, Dp), lambda b: (0, 0))

    args = [q_p, k_p, v_p]
    in_specs = [x_spec, x_spec, x_spec]
    if has_mask:
        args.append(mask_i8)
        in_specs.append(m_spec)
    args += [wq_h, bq_h, wk_h, bk_h, wv_h, bv_h, wo_h, bo_p]
    in_specs += [w_spec, b_spec, w_spec, b_spec, w_spec, b_spec, wo_spec, bo_spec]

    kernel = functools.partial(_mha_kernel, h=h, d_k=d_k, tq=tq,
                               compute_dtype=compute_dtype, exp_dtype=exp_dtype,
                               has_mask=has_mask)

    out = pl.pallas_call(
        kernel,
        out_shape=jax.ShapeDtypeStruct((B, S, Dp), jnp.float32),
        grid_spec=pltpu.PrefetchScalarGridSpec(
            num_scalar_prefetch=0,
            grid=grid,
            in_specs=in_specs,
            out_specs=x_spec,
        ),
        compiler_params=pltpu.CompilerParams(
            dimension_semantics=("parallel",),   # batch blocks shard across TCs
            vmem_limit_bytes=vmem_limit,
        ),
    )(*args)

    return out if pad == 0 else out[..., :D]


@functools.partial(jax.jit,
                   static_argnames=("h", "compute_dtype", "exp_dtype", "q_chunk"))
def multi_headed_attention(query, key, value, mask, params, h,
                           compute_dtype=jnp.bfloat16, exp_dtype=None, q_chunk=None):
    """Mirrors MultiHeadedAttention.forward (eval mode; dropout is identity)."""
    return _mha_forward(query, key, value, mask, params, h,
                        compute_dtype, exp_dtype, q_chunk)


# ------------------------------- reference -------------------------------------

def _reference(query, key, value, mask, params, h):
    """Pure-JAX reference matching the PyTorch forward (eval mode, f32)."""
    B, S, D = query.shape
    d_k = D // h
    (wq, bq), (wk, bk), (wv, bv), (wo, bo) = params
    hp = jax.lax.Precision.HIGHEST

    def lin(x, w, b):
        return jnp.dot(x, w.T, precision=hp) + b

    def heads(x):
        return x.reshape(B, S, h, d_k).transpose(0, 2, 1, 3)   # [B, h, S, d_k]

    q = heads(lin(query, wq, bq))
    k = heads(lin(key, wk, bk))
    v = heads(lin(value, wv, bv))
    scores = jnp.einsum("bhqd,bhkd->bhqk", q, k, precision=hp) / math.sqrt(d_k)
    if mask is not None:
        scores = jnp.where(mask[:, None, :, :] == 0, NEG_INF, scores)
    p = jax.nn.softmax(scores, axis=-1)
    x = jnp.einsum("bhqk,bhkd->bhqd", p, v, precision=hp)
    x = x.transpose(0, 2, 1, 3).reshape(B, S, D)
    return lin(x, wo, bo)


def _make_params(rng, d_model):
    # Deterministic nn.Linear-style params (uniform in +/- 1/sqrt(d_model)).
    bound = 1.0 / math.sqrt(d_model)
    keys = jax.random.split(rng, 8)
    params = []
    for i in range(4):
        w = jax.random.uniform(keys[2 * i], (d_model, d_model), jnp.float32, -bound, bound)
        b = jax.random.uniform(keys[2 * i + 1], (d_model,), jnp.float32, -bound, bound)
        params.append((w, b))
    return tuple(params)


if __name__ == "__main__":
    root = jax.random.PRNGKey(0)
    key_t1, key_t2 = jax.random.split(root)

    # --- Test 1: masked self-attention; D=32 is padded to a lane-dense 128 inside
    #     the wrapper; grid has 2 "parallel" batch-block steps. ---
    B, S, D, H = 4, 8, 32, 4
    kq, kk, kv, kp = jax.random.split(key_t1, 4)
    query = jax.random.normal(kq, (B, S, D), jnp.float32)
    key_in = jax.random.normal(kk, (B, S, D), jnp.float32)
    value = jax.random.normal(kv, (B, S, D), jnp.float32)
    mask = jnp.tril(jnp.ones((S, S), jnp.float32))[None].repeat(B, axis=0)
    params = _make_params(kp, D)

    ref = _reference(query, key_in, value, mask, params, H)

    out_f32 = jax.block_until_ready(
        multi_headed_attention(query, key_in, value, mask, params, h=H,
                               compute_dtype=jnp.float32))
    assert out_f32.shape == (B, S, D)
    assert jnp.allclose(out_f32, ref, atol=5e-3, rtol=5e-3), "f32 kernel mismatch"

    out_bf16 = jax.block_until_ready(
        multi_headed_attention(query, key_in, value, mask, params, h=H))
    assert out_bf16.shape == (B, S, D)
    assert jnp.allclose(out_bf16, ref, atol=3e-2, rtol=3e-2), "bf16 kernel mismatch"

    # --- Test 2: no mask (specialised path), lane-dense D=128 (no padding),
    #     q-chunked body (4 chunks of 8 query rows) exercising the fori_loop. ---
    B2, S2, D2, H2 = 2, 32, 128, 4
    kq2, kk2, kv2, kp2 = jax.random.split(key_t2, 4)
    q2 = jax.random.normal(kq2, (B2, S2, D2), jnp.float32)
    k2_in = jax.random.normal(kk2, (B2, S2, D2), jnp.float32)
    v2 = jax.random.normal(kv2, (B2, S2, D2), jnp.float32)
    params2 = _make_params(kp2, D2)

    ref2 = _reference(q2, k2_in, v2, None, params2, H2)
    out2 = jax.block_until_ready(
        multi_headed_attention(q2, k2_in, v2, None, params2, h=H2, q_chunk=8))
    assert out2.shape == (B2, S2, D2)
    assert jnp.allclose(out2, ref2, atol=3e-2, rtol=3e-2), "q-chunked kernel mismatch"

    print("KERNEL_OK")
</pallas_src>

<mosaic_0001>
module attributes {stable_mosaic.version = 11 : i64} {
  func.func @_mha_kernel(%arg0: i32, %arg1: memref<2x8x128xf32, #tpu.memory_space<vmem>>, %arg2: memref<2x8x128xf32, #tpu.memory_space<vmem>>, %arg3: memref<2x8x128xf32, #tpu.memory_space<vmem>>, %arg4: memref<2x8x8xi8, #tpu.memory_space<vmem>>, %arg5: memref<4x128x8xf32, #tpu.memory_space<vmem>>, %arg6: memref<4x1x8xf32, #tpu.memory_space<vmem>>, %arg7: memref<4x128x8xf32, #tpu.memory_space<vmem>>, %arg8: memref<4x1x8xf32, #tpu.memory_space<vmem>>, %arg9: memref<4x128x8xf32, #tpu.memory_space<vmem>>, %arg10: memref<4x1x8xf32, #tpu.memory_space<vmem>>, %arg11: memref<4x8x128xf32, #tpu.memory_space<vmem>>, %arg12: memref<1x128xf32, #tpu.memory_space<vmem>>, %arg13: memref<2x8x128xf32, #tpu.memory_space<vmem>>) attributes {dimension_semantics = [#tpu.dimension_semantics<parallel>], iteration_bounds = array<i64: 2>, scalar_prefetch = 0 : i64, scratch_operands = 0 : i64, tpu.core_type = #tpu.core_type<tc>, window_params = [{transform_indices = @transform_0, window_bounds = array<i64: 2, 8, 128>}, {transform_indices = @transform_1, window_bounds = array<i64: 2, 8, 128>}, {transform_indices = @transform_2, window_bounds = array<i64: 2, 8, 128>}, {transform_indices = @transform_3, window_bounds = array<i64: 2, 8, 8>}, {pipeline_mode = #tpu.pipeline_mode<synchronous>, transform_indices = @transform_4, window_bounds = array<i64: 4, 128, 8>}, {pipeline_mode = #tpu.pipeline_mode<synchronous>, transform_indices = @transform_5, window_bounds = array<i64: 4, 1, 8>}, {pipeline_mode = #tpu.pipeline_mode<synchronous>, transform_indices = @transform_6, window_bounds = array<i64: 4, 128, 8>}, {pipeline_mode = #tpu.pipeline_mode<synchronous>, transform_indices = @transform_7, window_bounds = array<i64: 4, 1, 8>}, {pipeline_mode = #tpu.pipeline_mode<synchronous>, transform_indices = @transform_8, window_bounds = array<i64: 4, 128, 8>}, {pipeline_mode = #tpu.pipeline_mode<synchronous>, transform_indices = @transform_9, window_bounds = array<i64: 4, 1, 8>}, {pipeline_mode = #tpu.pipeline_mode<synchronous>, transform_indices = @transform_10, window_bounds = array<i64: 4, 8, 128>}, {pipeline_mode = #tpu.pipeline_mode<synchronous>, transform_indices = @transform_11, window_bounds = array<i64: 1, 128>}, {transform_indices = @transform_12, window_bounds = array<i64: 2, 8, 128>}]} {
    %c0 = arith.constant 0 : index
    %c0_0 = arith.constant 0 : index
    %c0_1 = arith.constant 0 : index
    %0 = vector.load %arg2[%c0, %c0_0, %c0_1] : memref<2x8x128xf32, #tpu.memory_space<vmem>>, vector<2x8x128xf32>
    %1 = vector.shape_cast %0 : vector<2x8x128xf32> to vector<16x128xf32>
    %c0_2 = arith.constant 0 : index
    %c0_3 = arith.constant 0 : index
    %c0_4 = arith.constant 0 : index
    %2 = vector.load %arg3[%c0_2, %c0_3, %c0_4] : memref<2x8x128xf32, #tpu.memory_space<vmem>>, vector<2x8x128xf32>
    %3 = vector.shape_cast %2 : vector<2x8x128xf32> to vector<16x128xf32>
    %c0_5 = arith.constant 0 : index
    %c0_6 = arith.constant 0 : index
    %c0_7 = arith.constant 0 : index
    %4 = vector.load %arg7[%c0_5, %c0_6, %c0_7] : memref<4x128x8xf32, #tpu.memory_space<vmem>>, vector<1x128x8xf32>
    %5 = vector.shape_cast %4 : vector<1x128x8xf32> to vector<128x8xf32>
    %cst = arith.constant dense<0.000000e+00> : vector<16x8xf32>
    %6 = tpu.matmul %1, %5, %cst {dimension_numbers = #tpu.dot_dimension_numbers<[1], [0], [0], [1], [0, 0, 1, 1], [], []>} : vector<16x128xf32>, vector<128x8xf32>, vector<16x8xf32> -> vector<16x8xf32>
    %c0_8 = arith.constant 0 : index
    %c0_9 = arith.constant 0 : index
    %c0_10 = arith.constant 0 : index
    %7 = vector.load %arg8[%c0_8, %c0_9, %c0_10] : memref<4x1x8xf32, #tpu.memory_space<vmem>>, vector<1x1x8xf32>
    %8 = vector.shape_cast %7 : vector<1x1x8xf32> to vector<1x8xf32>
    %9 = vector.broadcast %8 : vector<1x8xf32> to vector<16x8xf32>
    %10 = arith.addf %6, %9 : vector<16x8xf32>
    %c1 = arith.constant 1 : index
    %c0_11 = arith.constant 0 : index
    %c0_12 = arith.constant 0 : index
    %11 = vector.load %arg7[%c1, %c0_11, %c0_12] : memref<4x128x8xf32, #tpu.memory_space<vmem>>, vector<1x128x8xf32>
    %12 = vector.shape_cast %11 : vector<1x128x8xf32> to vector<128x8xf32>
    %cst_13 = arith.constant dense<0.000000e+00> : vector<16x8xf32>
    %13 = tpu.matmul %1, %12, %cst_13 {dimension_numbers = #tpu.dot_dimension_numbers<[1], [0], [0], [1], [0, 0, 1, 1], [], []>} : vector<16x128xf32>, vector<128x8xf32>, vector<16x8xf32> -> vector<16x8xf32>
    %c1_14 = arith.constant 1 : index
    %c0_15 = arith.constant 0 : index
    %c0_16 = arith.constant 0 : index
    %14 = vector.load %arg8[%c1_14, %c0_15, %c0_16] : memref<4x1x8xf32, #tpu.memory_space<vmem>>, vector<1x1x8xf32>
    %15 = vector.shape_cast %14 : vector<1x1x8xf32> to vector<1x8xf32>
    %16 = vector.broadcast %15 : vector<1x8xf32> to vector<16x8xf32>
    %17 = arith.addf %13, %16 : vector<16x8xf32>
    %c2 = arith.constant 2 : index
    %c0_17 = arith.constant 0 : index
    %c0_18 = arith.constant 0 : index
    %18 = vector.load %arg7[%c2, %c0_17, %c0_18] : memref<4x128x8xf32, #tpu.memory_space<vmem>>, vector<1x128x8xf32>
    %19 = vector.shape_cast %18 : vector<1x128x8xf32> to vector<128x8xf32>
    %cst_19 = arith.constant dense<0.000000e+00> : vector<16x8xf32>
    %20 = tpu.matmul %1, %19, %cst_19 {dimension_numbers = #tpu.dot_dimension_numbers<[1], [0], [0], [1], [0, 0, 1, 1], [], []>} : vector<16x128xf32>, vector<128x8xf32>, vector<16x8xf32> -> vector<16x8xf32>
    %c2_20 = arith.constant 2 : index
    %c0_21 = arith.constant 0 : index
    %c0_22 = arith.constant 0 : index
    %21 = vector.load %arg8[%c2_20, %c0_21, %c0_22] : memref<4x1x8xf32, #tpu.memory_space<vmem>>, vector<1x1x8xf32>
    %22 = vector.shape_cast %21 : vector<1x1x8xf32> to vector<1x8xf32>
    %23 = vector.broadcast %22 : vector<1x8xf32> to vector<16x8xf32>
    %24 = arith.addf %20, %23 : vector<16x8xf32>
    %c3 = arith.constant 3 : index
    %c0_23 = arith.constant 0 : index
    %c0_24 = arith.constant 0 : index
    %25 = vector.load %arg7[%c3, %c0_23, %c0_24] : memref<4x128x8xf32, #tpu.memory_space<vmem>>, vector<1x128x8xf32>
    %26 = vector.shape_cast %25 : vector<1x128x8xf32> to vector<128x8xf32>
    %cst_25 = arith.constant dense<0.000000e+00> : vector<16x8xf32>
    %27 = tpu.matmul %1, %26, %cst_25 {dimension_numbers = #tpu.dot_dimension_numbers<[1], [0], [0], [1], [0, 0, 1, 1], [], []>} : vector<16x128xf32>, vector<128x8xf32>, vector<16x8xf32> -> vector<16x8xf32>
    %c3_26 = arith.constant 3 : index
    %c0_27 = arith.constant 0 : index
    %c0_28 = arith.constant 0 : index
    %28 = vector.load %arg8[%c3_26, %c0_27, %c0_28] : memref<4x1x8xf32, #tpu.memory_space<vmem>>, vector<1x1x8xf32>
    %29 = vector.shape_cast %28 : vector<1x1x8xf32> to vector<1x8xf32>
    %30 = vector.broadcast %29 : vector<1x8xf32> to vector<16x8xf32>
    %31 = arith.addf %27, %30 : vector<16x8xf32>
    %32 = vector.shape_cast %10 : vector<16x8xf32> to vector<1x16x8xf32>
    %33 = vector.shape_cast %17 : vector<16x8xf32> to vector<1x16x8xf32>
    %34 = vector.shape_cast %24 : vector<16x8xf32> to vector<1x16x8xf32>
    %35 = vector.shape_cast %31 : vector<16x8xf32> to vector<1x16x8xf32>
    %36 = tpu.concatenate %32, %33, %34, %35 in 0 : vector<1x16x8xf32>, vector<1x16x8xf32>, vector<1x16x8xf32>, vector<1x16x8xf32> -> vector<4x16x8xf32>
    %37 = vector.shape_cast %36 : vector<4x16x8xf32> to vector<8x8x8xf32>
    %c0_29 = arith.constant 0 : index
    %c0_30 = arith.constant 0 : index
    %c0_31 = arith.constant 0 : index
    %38 = vector.load %arg9[%c0_29, %c0_30, %c0_31] : memref<4x128x8xf32, #tpu.memory_space<vmem>>, vector<1x128x8xf32>
    %39 = vector.shape_cast %38 : vector<1x128x8xf32> to vector<128x8xf32>
    %cst_32 = arith.constant dense<0.000000e+00> : vector<16x8xf32>
    %40 = tpu.matmul %3, %39, %cst_32 {dimension_numbers = #tpu.dot_dimension_numbers<[1], [0], [0], [1], [0, 0, 1, 1], [], []>} : vector<16x128xf32>, vector<128x8xf32>, vector<16x8xf32> -> vector<16x8xf32>
    %c0_33 = arith.constant 0 : index
    %c0_34 = arith.constant 0 : index
    %c0_35 = arith.constant 0 : index
    %41 = vector.load %arg10[%c0_33, %c0_34, %c0_35] : memref<4x1x8xf32, #tpu.memory_space<vmem>>, vector<1x1x8xf32>
    %42 = vector.shape_cast %41 : vector<1x1x8xf32> to vector<1x8xf32>
    %43 = vector.broadcast %42 : vector<1x8xf32> to vector<16x8xf32>
    %44 = arith.addf %40, %43 : vector<16x8xf32>
    %c1_36 = arith.constant 1 : index
    %c0_37 = arith.constant 0 : index
    %c0_38 = arith.constant 0 : index
    %45 = vector.load %arg9[%c1_36, %c0_37, %c0_38] : memref<4x128x8xf32, #tpu.memory_space<vmem>>, vector<1x128x8xf32>
    %46 = vector.shape_cast %45 : vector<1x128x8xf32> to vector<128x8xf32>
    %cst_39 = arith.constant dense<0.000000e+00> : vector<16x8xf32>
    %47 = tpu.matmul %3, %46, %cst_39 {dimension_numbers = #tpu.dot_dimension_numbers<[1], [0], [0], [1], [0, 0, 1, 1], [], []>} : vector<16x128xf32>, vector<128x8xf32>, vector<16x8xf32> -> vector<16x8xf32>
    %c1_40 = arith.constant 1 : index
    %c0_41 = arith.constant 0 : index
    %c0_42 = arith.constant 0 : index
    %48 = vector.load %arg10[%c1_40, %c0_41, %c0_42] : memref<4x1x8xf32, #tpu.memory_space<vmem>>, vector<1x1x8xf32>
    %49 = vector.shape_cast %48 : vector<1x1x8xf32> to vector<1x8xf32>
    %50 = vector.broadcast %49 : vector<1x8xf32> to vector<16x8xf32>
    %51 = arith.addf %47, %50 : vector<16x8xf32>
    %c2_43 = arith.constant 2 : index
    %c0_44 = arith.constant 0 : index
    %c0_45 = arith.constant 0 : index
    %52 = vector.load %arg9[%c2_43, %c0_44, %c0_45] : memref<4x128x8xf32, #tpu.memory_space<vmem>>, vector<1x128x8xf32>
    %53 = vector.shape_cast %52 : vector<1x128x8xf32> to vector<128x8xf32>
    %cst_46 = arith.constant dense<0.000000e+00> : vector<16x8xf32>
    %54 = tpu.matmul %3, %53, %cst_46 {dimension_numbers = #tpu.dot_dimension_numbers<[1], [0], [0], [1], [0, 0, 1, 1], [], []>} : vector<16x128xf32>, vector<128x8xf32>, vector<16x8xf32> -> vector<16x8xf32>
    %c2_47 = arith.constant 2 : index
    %c0_48 = arith.constant 0 : index
    %c0_49 = arith.constant 0 : index
    %55 = vector.load %arg10[%c2_47, %c0_48, %c0_49] : memref<4x1x8xf32, #tpu.memory_space<vmem>>, vector<1x1x8xf32>
    %56 = vector.shape_cast %55 : vector<1x1x8xf32> to vector<1x8xf32>
    %57 = vector.broadcast %56 : vector<1x8xf32> to vector<16x8xf32>
    %58 = arith.addf %54, %57 : vector<16x8xf32>
    %c3_50 = arith.constant 3 : index
    %c0_51 = arith.constant 0 : index
    %c0_52 = arith.constant 0 : index
    %59 = vector.load %arg9[%c3_50, %c0_51, %c0_52] : memref<4x128x8xf32, #tpu.memory_space<vmem>>, vector<1x128x8xf32>
    %60 = vector.shape_cast %59 : vector<1x128x8xf32> to vector<128x8xf32>
    %cst_53 = arith.constant dense<0.000000e+00> : vector<16x8xf32>
    %61 = tpu.matmul %3, %60, %cst_53 {dimension_numbers = #tpu.dot_dimension_numbers<[1], [0], [0], [1], [0, 0, 1, 1], [], []>} : vector<16x128xf32>, vector<128x8xf32>, vector<16x8xf32> -> vector<16x8xf32>
    %c3_54 = arith.constant 3 : index
    %c0_55 = arith.constant 0 : index
    %c0_56 = arith.constant 0 : index
    %62 = vector.load %arg10[%c3_54, %c0_55, %c0_56] : memref<4x1x8xf32, #tpu.memory_space<vmem>>, vector<1x1x8xf32>
    %63 = vector.shape_cast %62 : vector<1x1x8xf32> to vector<1x8xf32>
    %64 = vector.broadcast %63 : vector<1x8xf32> to vector<16x8xf32>
    %65 = arith.addf %61, %64 : vector<16x8xf32>
    %66 = vector.shape_cast %44 : vector<16x8xf32> to vector<1x16x8xf32>
    %67 = vector.shape_cast %51 : vector<16x8xf32> to vector<1x16x8xf32>
    %68 = vector.shape_cast %58 : vector<16x8xf32> to vector<1x16x8xf32>
    %69 = vector.shape_cast %65 : vector<16x8xf32> to vector<1x16x8xf32>
    %70 = tpu.concatenate %66, %67, %68, %69 in 0 : vector<1x16x8xf32>, vector<1x16x8xf32>, vector<1x16x8xf32>, vector<1x16x8xf32> -> vector<4x16x8xf32>
    %71 = vector.shape_cast %70 : vector<4x16x8xf32> to vector<8x8x8xf32>
    %c0_57 = arith.constant 0 : index
    %c0_58 = arith.constant 0 : index
    %c0_59 = arith.constant 0 : index
    %72 = vector.load %arg11[%c0_57, %c0_58, %c0_59] : memref<4x8x128xf32, #tpu.memory_space<vmem>>, vector<4x8x128xf32>
    %c0_60 = arith.constant 0 : index
    %c0_61 = arith.constant 0 : index
    %73 = vector.load %arg12[%c0_60, %c0_61] : memref<1x128xf32, #tpu.memory_space<vmem>>, vector<1x128xf32>
    %c0_62 = arith.constant 0 : index
    %c0_63 = arith.constant 0 : index
    %c0_64 = arith.constant 0 : index
    %74 = vector.load %arg1[%c0_62, %c0_63, %c0_64] : memref<2x8x128xf32, #tpu.memory_space<vmem>>, vector<2x8x128xf32>
    %75 = vector.shape_cast %74 : vector<2x8x128xf32> to vector<16x128xf32>
    %c0_65 = arith.constant 0 : index
    %c0_66 = arith.constant 0 : index
    %c0_67 = arith.constant 0 : index
    %76 = vector.load %arg5[%c0_65, %c0_66, %c0_67] : memref<4x128x8xf32, #tpu.memory_space<vmem>>, vector<1x128x8xf32>
    %77 = vector.shape_cast %76 : vector<1x128x8xf32> to vector<128x8xf32>
    %cst_68 = arith.constant dense<0.000000e+00> : vector<16x8xf32>
    %78 = tpu.matmul %75, %77, %cst_68 {dimension_numbers = #tpu.dot_dimension_numbers<[1], [0], [0], [1], [0, 0, 1, 1], [], []>} : vector<16x128xf32>, vector<128x8xf32>, vector<16x8xf32> -> vector<16x8xf32>
    %c0_69 = arith.constant 0 : index
    %c0_70 = arith.constant 0 : index
    %c0_71 = arith.constant 0 : index
    %79 = vector.load %arg6[%c0_69, %c0_70, %c0_71] : memref<4x1x8xf32, #tpu.memory_space<vmem>>, vector<1x1x8xf32>
    %80 = vector.shape_cast %79 : vector<1x1x8xf32> to vector<1x8xf32>
    %81 = vector.broadcast %80 : vector<1x8xf32> to vector<16x8xf32>
    %82 = arith.addf %78, %81 : vector<16x8xf32>
    %c1_72 = arith.constant 1 : index
    %c0_73 = arith.constant 0 : index
    %c0_74 = arith.constant 0 : index
    %83 = vector.load %arg5[%c1_72, %c0_73, %c0_74] : memref<4x128x8xf32, #tpu.memory_space<vmem>>, vector<1x128x8xf32>
    %84 = vector.shape_cast %83 : vector<1x128x8xf32> to vector<128x8xf32>
    %cst_75 = arith.constant dense<0.000000e+00> : vector<16x8xf32>
    %85 = tpu.matmul %75, %84, %cst_75 {dimension_numbers = #tpu.dot_dimension_numbers<[1], [0], [0], [1], [0, 0, 1, 1], [], []>} : vector<16x128xf32>, vector<128x8xf32>, vector<16x8xf32> -> vector<16x8xf32>
    %c1_76 = arith.constant 1 : index
    %c0_77 = arith.constant 0 : index
    %c0_78 = arith.constant 0 : index
    %86 = vector.load %arg6[%c1_76, %c0_77, %c0_78] : memref<4x1x8xf32, #tpu.memory_space<vmem>>, vector<1x1x8xf32>
    %87 = vector.shape_cast %86 : vector<1x1x8xf32> to vector<1x8xf32>
    %88 = vector.broadcast %87 : vector<1x8xf32> to vector<16x8xf32>
    %89 = arith.addf %85, %88 : vector<16x8xf32>
    %c2_79 = arith.constant 2 : index
    %c0_80 = arith.constant 0 : index
    %c0_81 = arith.constant 0 : index
    %90 = vector.load %arg5[%c2_79, %c0_80, %c0_81] : memref<4x128x8xf32, #tpu.memory_space<vmem>>, vector<1x128x8xf32>
    %91 = vector.shape_cast %90 : vector<1x128x8xf32> to vector<128x8xf32>
    %cst_82 = arith.constant dense<0.000000e+00> : vector<16x8xf32>
    %92 = tpu.matmul %75, %91, %cst_82 {dimension_numbers = #tpu.dot_dimension_numbers<[1], [0], [0], [1], [0, 0, 1, 1], [], []>} : vector<16x128xf32>, vector<128x8xf32>, vector<16x8xf32> -> vector<16x8xf32>
    %c2_83 = arith.constant 2 : index
    %c0_84 = arith.constant 0 : index
    %c0_85 = arith.constant 0 : index
    %93 = vector.load %arg6[%c2_83, %c0_84, %c0_85] : memref<4x1x8xf32, #tpu.memory_space<vmem>>, vector<1x1x8xf32>
    %94 = vector.shape_cast %93 : vector<1x1x8xf32> to vector<1x8xf32>
    %95 = vector.broadcast %94 : vector<1x8xf32> to vector<16x8xf32>
    %96 = arith.addf %92, %95 : vector<16x8xf32>
    %c3_86 = arith.constant 3 : index
    %c0_87 = arith.constant 0 : index
    %c0_88 = arith.constant 0 : index
    %97 = vector.load %arg5[%c3_86, %c0_87, %c0_88] : memref<4x128x8xf32, #tpu.memory_space<vmem>>, vector<1x128x8xf32>
    %98 = vector.shape_cast %97 : vector<1x128x8xf32> to vector<128x8xf32>
    %cst_89 = arith.constant dense<0.000000e+00> : vector<16x8xf32>
    %99 = tpu.matmul %75, %98, %cst_89 {dimension_numbers = #tpu.dot_dimension_numbers<[1], [0], [0], [1], [0, 0, 1, 1], [], []>} : vector<16x128xf32>, vector<128x8xf32>, vector<16x8xf32> -> vector<16x8xf32>
    %c3_90 = arith.constant 3 : index
    %c0_91 = arith.constant 0 : index
    %c0_92 = arith.constant 0 : index
    %100 = vector.load %arg6[%c3_90, %c0_91, %c0_92] : memref<4x1x8xf32, #tpu.memory_space<vmem>>, vector<1x1x8xf32>
    %101 = vector.shape_cast %100 : vector<1x1x8xf32> to vector<1x8xf32>
    %102 = vector.broadcast %101 : vector<1x8xf32> to vector<16x8xf32>
    %103 = arith.addf %99, %102 : vector<16x8xf32>
    %104 = vector.shape_cast %82 : vector<16x8xf32> to vector<1x16x8xf32>
    %105 = vector.shape_cast %89 : vector<16x8xf32> to vector<1x16x8xf32>
    %106 = vector.shape_cast %96 : vector<16x8xf32> to vector<1x16x8xf32>
    %107 = vector.shape_cast %103 : vector<16x8xf32> to vector<1x16x8xf32>
    %108 = tpu.concatenate %104, %105, %106, %107 in 0 : vector<1x16x8xf32>, vector<1x16x8xf32>, vector<1x16x8xf32>, vector<1x16x8xf32> -> vector<4x16x8xf32>
    %109 = vector.shape_cast %108 : vector<4x16x8xf32> to vector<8x8x8xf32>
    "tpu.trace_start"() <{level = 10 : i32, message = "bqd,bkd->bqk"}> : () -> ()
    %cst_93 = arith.constant dense<0.000000e+00> : vector<8x8x8xf32>
    %110 = tpu.matmul %109, %37, %cst_93 {dimension_numbers = #tpu.dot_dimension_numbers<[2], [2], [1], [1], [0, 0, 0, 1, 1, 1], [0], [0]>} : vector<8x8x8xf32>, vector<8x8x8xf32>, vector<8x8x8xf32> -> vector<8x8x8xf32>
    "tpu.trace_stop"() : () -> ()
    %c0_94 = arith.constant 0 : index
    %c0_95 = arith.constant 0 : index
    %c0_96 = arith.constant 0 : index
    %111 = vector.load %arg4[%c0_94, %c0_95, %c0_96] : memref<2x8x8xi8, #tpu.memory_space<vmem>>, vector<2x8x8xi8>
    %112 = arith.extsi %111 : vector<2x8x8xi8> to vector<2x8x8xi32>
    %c0_i32 = arith.constant 0 : i32
    %113 = vector.broadcast %c0_i32 : i32 to vector<2x8x8xi32>
    %114 = arith.cmpi eq, %112, %113 : vector<2x8x8xi32>
    %cst_97 = arith.constant -1.000000e+09 : f32
    %cst_98 = arith.constant 0.000000e+00 : f32
    %115 = vector.broadcast %cst_97 : f32 to vector<2x8x8xf32>
    %116 = vector.broadcast %cst_98 : f32 to vector<2x8x8xf32>
    %117 = arith.select %114, %115, %116 : vector<2x8x8xi1>, vector<2x8x8xf32>
    %118 = vector.shape_cast %110 : vector<8x8x8xf32> to vector<4x2x8x8xf32>
    %119 = vector.shape_cast %117 : vector<2x8x8xf32> to vector<1x2x8x8xf32>
    %120 = vector.broadcast %119 : vector<1x2x8x8xf32> to vector<4x2x8x8xf32>
    %121 = arith.addf %118, %120 : vector<4x2x8x8xf32>
    %122 = vector.shape_cast %121 : vector<4x2x8x8xf32> to vector<8x8x8xf32>
    %cst_99 = arith.constant dense<0xFF800000> : vector<8x8xf32>
    %123 = vector.multi_reduction <maximumf>, %122, %cst_99 [2] : vector<8x8x8xf32> to vector<8x8xf32>
    %124 = vector.shape_cast %123 : vector<8x8xf32> to vector<8x8x1xf32>
    %125 = vector.broadcast %124 : vector<8x8x1xf32> to vector<8x8x8xf32>
    %126 = arith.subf %122, %125 : vector<8x8x8xf32>
    %127 = math.exp %126 : vector<8x8x8xf32>
    %cst_100 = arith.constant dense<0.000000e+00> : vector<8x8xf32>
    %128 = vector.multi_reduction <add>, %127, %cst_100 [2] : vector<8x8x8xf32> to vector<8x8xf32>
    %129 = vector.shape_cast %128 : vector<8x8xf32> to vector<8x8x1xf32>
    %130 = tpu.reciprocal %129 {approx = true} : vector<8x8x1xf32> -> vector<8x8x1xf32>
    %131 = arith.mulf %129, %130 : vector<8x8x1xf32>
    %cst_101 = arith.constant 2.000000e+00 : f32
    %132 = vector.broadcast %cst_101 : f32 to vector<8x8x1xf32>
    %133 = arith.subf %132, %131 : vector<8x8x1xf32>
    %134 = arith.mulf %130, %133 : vector<8x8x1xf32>
    "tpu.trace_start"() <{level = 10 : i32, message = "bqk,bkd->bqd"}> : () -> ()
    %cst_102 = arith.constant dense<0.000000e+00> : vector<8x8x8xf32>
    %135 = tpu.matmul %127, %71, %cst_102 {dimension_numbers = #tpu.dot_dimension_numbers<[2], [1], [1], [2], [0, 0, 0, 1, 1, 2], [0], [0]>} : vector<8x8x8xf32>, vector<8x8x8xf32>, vector<8x8x8xf32> -> vector<8x8x8xf32>
    "tpu.trace_stop"() : () -> ()
    %136 = vector.broadcast %134 : vector<8x8x1xf32> to vector<8x8x8xf32>
    %137 = arith.mulf %135, %136 : vector<8x8x8xf32>
    %138 = vector.shape_cast %137 : vector<8x8x8xf32> to vector<4x16x8xf32>
    %cst_103 = arith.constant dense<0.000000e+00> : vector<4x16x128xf32>
    %139 = tpu.matmul %138, %72, %cst_103 {dimension_numbers = #tpu.dot_dimension_numbers<[2], [1], [1], [2], [0, 0, 0, 1, 1, 2], [0], [0]>} : vector<4x16x8xf32>, vector<4x8x128xf32>, vector<4x16x128xf32> -> vector<4x16x128xf32>
    %cst_104 = arith.constant dense<0.000000e+00> : vector<16x128xf32>
    %140 = vector.multi_reduction <add>, %139, %cst_104 [0] : vector<4x16x128xf32> to vector<16x128xf32>
    %141 = vector.broadcast %73 : vector<1x128xf32> to vector<16x128xf32>
    %142 = arith.addf %140, %141 : vector<16x128xf32>
    %143 = vector.shape_cast %142 : vector<16x128xf32> to vector<2x8x128xf32>
    %c0_105 = arith.constant 0 : index
    %c0_106 = arith.constant 0 : index
    %c0_107 = arith.constant 0 : index
    %144 = vector.load %arg13[%c0_105, %c0_106, %c0_107] : memref<2x8x128xf32, #tpu.memory_space<vmem>>, vector<2x8x128xf32>
    tpu.vector_store %arg13[%c0_105, %c0_106, %c0_107], %143 {strides = array<i32>} : memref<2x8x128xf32, #tpu.memory_space<vmem>>, vector<2x8x128xf32>,
    return
  }
  func.func @transform_0(%arg0: i32) -> (i32, i32, i32) {
    %c0_i32 = arith.constant 0 : i32
    %c0_i32_0 = arith.constant 0 : i32
    %c0_i32_1 = arith.constant 0 : i32
    return %arg0, %c0_i32, %c0_i32_0 : i32, i32, i32
  }
  func.func @transform_1(%arg0: i32) -> (i32, i32, i32) {
    %c0_i32 = arith.constant 0 : i32
    %c0_i32_0 = arith.constant 0 : i32
    %c0_i32_1 = arith.constant 0 : i32
    return %arg0, %c0_i32, %c0_i32_0 : i32, i32, i32
  }
  func.func @transform_2(%arg0: i32) -> (i32, i32, i32) {
    %c0_i32 = arith.constant 0 : i32
    %c0_i32_0 = arith.constant 0 : i32
    %c0_i32_1 = arith.constant 0 : i32
    return %arg0, %c0_i32, %c0_i32_0 : i32, i32, i32
  }
  func.func @transform_3(%arg0: i32) -> (i32, i32, i32) {
    %c0_i32 = arith.constant 0 : i32
    %c0_i32_0 = arith.constant 0 : i32
    %c0_i32_1 = arith.constant 0 : i32
    return %arg0, %c0_i32, %c0_i32_0 : i32, i32, i32
  }
  func.func @transform_4(%arg0: i32) -> (i32, i32, i32) {
    %c0_i32 = arith.constant 0 : i32
    %c0_i32_0 = arith.constant 0 : i32
    %c0_i32_1 = arith.constant 0 : i32
    %c0_i32_2 = arith.constant 0 : i32
    return %c0_i32, %c0_i32_0, %c0_i32_1 : i32, i32, i32
  }
  func.func @transform_5(%arg0: i32) -> (i32, i32, i32) {
    %c0_i32 = arith.constant 0 : i32
    %c0_i32_0 = arith.constant 0 : i32
    %c0_i32_1 = arith.constant 0 : i32
    %c0_i32_2 = arith.constant 0 : i32
    return %c0_i32, %c0_i32_0, %c0_i32_1 : i32, i32, i32
  }
  func.func @transform_6(%arg0: i32) -> (i32, i32, i32) {
    %c0_i32 = arith.constant 0 : i32
    %c0_i32_0 = arith.constant 0 : i32
    %c0_i32_1 = arith.constant 0 : i32
    %c0_i32_2 = arith.constant 0 : i32
    return %c0_i32, %c0_i32_0, %c0_i32_1 : i32, i32, i32
  }
  func.func @transform_7(%arg0: i32) -> (i32, i32, i32) {
    %c0_i32 = arith.constant 0 : i32
    %c0_i32_0 = arith.constant 0 : i32
    %c0_i32_1 = arith.constant 0 : i32
    %c0_i32_2 = arith.constant 0 : i32
    return %c0_i32, %c0_i32_0, %c0_i32_1 : i32, i32, i32
  }
  func.func @transform_8(%arg0: i32) -> (i32, i32, i32) {
    %c0_i32 = arith.constant 0 : i32
    %c0_i32_0 = arith.constant 0 : i32
    %c0_i32_1 = arith.constant 0 : i32
    %c0_i32_2 = arith.constant 0 : i32
    return %c0_i32, %c0_i32_0, %c0_i32_1 : i32, i32, i32
  }
  func.func @transform_9(%arg0: i32) -> (i32, i32, i32) {
    %c0_i32 = arith.constant 0 : i32
    %c0_i32_0 = arith.constant 0 : i32
    %c0_i32_1 = arith.constant 0 : i32
    %c0_i32_2 = arith.constant 0 : i32
    return %c0_i32, %c0_i32_0, %c0_i32_1 : i32, i32, i32
  }
  func.func @transform_10(%arg0: i32) -> (i32, i32, i32) {
    %c0_i32 = arith.constant 0 : i32
    %c0_i32_0 = arith.constant 0 : i32
    %c0_i32_1 = arith.constant 0 : i32
    %c0_i32_2 = arith.constant 0 : i32
    return %c0_i32, %c0_i32_0, %c0_i32_1 : i32, i32, i32
  }
  func.func @transform_11(%arg0: i32) -> (i32, i32) {
    %c0_i32 = arith.constant 0 : i32
    %c0_i32_0 = arith.constant 0 : i32
    %c0_i32_1 = arith.constant 0 : i32
    return %c0_i32, %c0_i32_0 : i32, i32
  }
  func.func @transform_12(%arg0: i32) -> (i32, i32, i32) {
    %c0_i32 = arith.constant 0 : i32
    %c0_i32_0 = arith.constant 0 : i32
    %c0_i32_1 = arith.constant 0 : i32
    return %arg0, %c0_i32, %c0_i32_0 : i32, i32, i32
  }
}

</mosaic_0001>

<bundles_post_ra>
// kernel: multi_headed_attention.1
= control target key start
LH: loop header
LB: loop body
LE: loop exit
PB: predicated region body
PF: predicated region fallthrough
CT: control target
= control target key end

     0   :  { %s3012_s0 = inlined_call_operand.vmem [shape: f32[4,8,128], index: 0, kind: input, shape index: {}]   ;;  %s3013_s1 = inlined_call_operand.vmem [shape: f32[4,8,128], index: 1, kind: input, shape index: {}]   ;;  %s3014_s2 = inlined_call_operand.vmem [shape: f32[4,8,128], index: 2, kind: input, shape index: {}]   ;;  %s3015_s3 = inlined_call_operand.vmem [shape: s8[4,8,8], index: 3, kind: input, shape index: {}]   ;;  %s3016_s4 = inlined_call_operand.vmem [shape: f32[4,128,8], index: 4, kind: input, shape index: {}]   ;;  %s3017_s5 = inlined_call_operand.vmem [shape: f32[4,1,8], index: 5, kind: input, shape index: {}]   ;;  %s3018_s6 = inlined_call_operand.vmem [shape: f32[4,128,8], index: 6, kind: input, shape index: {}]   ;;  %s3019_s7 = inlined_call_operand.vmem [shape: f32[4,1,8], index: 7, kind: input, shape index: {}]   ;;  %s3020_s8 = inlined_call_operand.vmem [shape: f32[4,128,8], index: 8, kind: input, shape index: {}]   ;;  %s3021_s9 = inlined_call_operand.vmem [shape: f32[4,1,8], index: 9, kind: input, shape index: {}]   ;;  %s3022_s10 = inlined_call_operand.vmem [shape: f32[4,8,128], index: 10, kind: input, shape index: {}]   ;;  %s3023_s11 = inlined_call_operand.vmem [shape: f32[1,128], index: 11, kind: input, shape index: {}]   ;;  %s3024_s12 = inlined_call_operand.hbm [shape: f32[4,8,128], index: 12, kind: output, shape index: {}]  }
   0x1   :  { %3028 = sst [smem:[#allocation8_spill]] %s3018_s6 }
   0x2   :  { %17 = vsyncpa [#allocation3], 0 }
   0x3   :  { %19 = vsyncpa [#allocation3 + $0x1], 0  ;;  %s2217_s21 = smov 0   ;;  %s2219_s22 = smov 0  }
   0x4   :  { %s2221_s23 = smov 0   ;;  %s2223_s24 = smov 0  }
   0x5 LB: > { %3029 = sst [smem:[#allocation5_spill]] %s2143_s23  ;;  %s2238_s25 = sadd.s32 4294967295, %s2147_s24   ;;  %s2147_s24 = sphi %s2223_s24, %s3038_s24   ;;  %s2143_s23 = sphi %s2221_s23, %s3040_s23   ;;  %s2139_s22 = sphi %s2219_s22, %s3042_s22   ;;  %s2135_s21 = sphi %s2217_s21, %s3041_s21  }
   0x6   : > { %s1790_s26 = sadd.s32 4294967294, %s2147_s24   ;;  %s2242_s27 = sadd.s32 1, %s2147_s24  }
   0x7   : > { %3030 = sst [smem:[#allocation6_spill]] %s2242_s27  ;;  %s304_s28 = sadd.s32 1, %s2143_s23 }
   0x8   : > { %s301_s29 = ssub.s32 %s2147_s24, %s2242_s27  ;;  %p314_p0 = scmp.ne.s32.totalorder %s2143_s23, %s2139_s22 }
   0x9   : > { %p302_p1 = scmp.eq.s32.totalorder %s301_s29, 0  ;;  %p315_p2 = scmp.eq.s32.totalorder %s2238_s25, 1 }
   0xa   : > { %p320_p3 = scmp.ne.s32.totalorder %s2139_s22, %s2135_s21  ;;  %p321_p4 = scmp.eq.s32.totalorder %s1790_s26, 1 }
   0xb   : > { %s2253_s30 = scalar_select %p302_p1, %s2143_s23, %s304_s28  }
   0xc   : > { %p2255_p5 = por %p315_p2, %p314_p0  ;;  %p2259_p6 = por %p321_p4, %p320_p3 }
   0xd   : > { %3031 = sst [smem:[#allocation7_spill]] %s2253_s30  ;;  %p1793_p7 = scmp.ge.s32.totalorder %s2147_s24, 1 }
   0xe   : > { %p399_p8 = scmp.lt.s32.totalorder %s2147_s24, 3 }
  0x10   : > { %p400_p9 = pnand %p1793_p7, %p399_p8 }
  0x11   : > { %s3034_s6 = sld [smem:[#allocation8_spill]] (!%p400_p9)  ;;  %s3035_s18 = sshll.u32 (!%p400_p9), %s2238_s25, 1 }
  0x12   : > { %403 = sbr.rel (%p400_p9) target bundleno = 822 (0x336), region = 68  ;;  %p2556_p10 = scmp.lt.s32.totalorder (!%p400_p9), %s3035_s18, 3 }
  0x13   : > { %s3037_s16 = sshll.u32 (!%p400_p9), %s2238_s25, 1  ;;  %s453_s30 = sand.u32 (!%p400_p9), 1, %s2139_s22  }
  0x14   : > { %s1677_s28 = scalar_lea.sflag (!%p400_p9), [#allocation3], %s453_s30 }
  0x17   : > { %v500_v0 = vld [vmem:[%s3034_s6 + $0x78] sm:$0xff]  ;;  %v499_v2 = vld [vmem:[%s3034_s6 + $0x70] sm:$0xff]  ;;  %v498_v6 = vld [vmem:[%s3034_s6 + $0x68] sm:$0xff]  ;;  %s3044_s16 = smov (!%p2556_p10, %s3037_s16), 3  ;;  %vm1026_vm0 = vcmask 64512  }
  0x18   : > { %v1818_v1 = vld [vmem:[%s3034_s6 + $0xf8] sm:$0xff]  ;;  %505 = vmatpush.msra.mxu0 %v500_v0  ;;  %v1817_v3 = vld [vmem:[%s3034_s6 + $0xf0] sm:$0xff]  ;;  %v1816_v7 = vld [vmem:[%s3034_s6 + $0xe8] sm:$0xff]  ;;  %s2615_s19 = sshll.u32 %s3044_s16, 3  ;;  %s1802_s29 = sshll.u32 %s3044_s16, 1 }
  0x19   : > { %550 = vmatpush.msra.mxu1 %v1818_v1  ;;  %v1835_v4 = vld [vmem:[%s3034_s6 + $0x178] sm:$0xff]  ;;  %v1834_v8 = vld [vmem:[%s3034_s6 + $0x170] sm:$0xff]  ;;  %v497_v10 = vld [vmem:[%s3034_s6 + $0x60] sm:$0xff]  ;;  %s2642_s27 = scalar_lea.vmem %s3013_s1, %s2615_s19  ;;  %s2755_s23 = scalar_lea.vmem %s3014_s2, %s2615_s19 }
  0x1a   : > { %v1852_v5 = vld [vmem:[%s3034_s6 + $0x1f8] sm:$0xff]  ;;  %595 = vmatpush.msra.mxu2 %v1835_v4  ;;  %506 = vmatpush.msra.mxu0 %v499_v2  ;;  %v1851_v9 = vld [vmem:[%s3034_s6 + $0x1f0] sm:$0xff]  ;;  %v1815_v11 = vld [vmem:[%s3034_s6 + $0xe0] sm:$0xff]  ;;  %s460_s15 = scalar_lea.vmem %s3012_s0, %s2615_s19  ;;  %s478_s17 = scalar_lea.vmem %s3015_s3, %s1802_s29 }
  0x1b   : > { %640 = vmatpush.msra.mxu3 %v1852_v5  ;;  %551 = vmatpush.msra.mxu1 %v1817_v3  ;;  %v1833_v12 = vld [vmem:[%s3034_s6 + $0x168] sm:$0xff]  ;;  %v1832_v14 = vld [vmem:[%s3034_s6 + $0x160] sm:$0xff]  ;;  %v496_v16 = vld [vmem:[%s3034_s6 + $0x58] sm:$0xff]  ;;  %s1794_s29 = sshll.u32 %s453_s30, 4  ;;  %s1993_s16 = sshll.u32 %s2238_s25, 4 }
  0x1c   : > { %596 = vmatpush.msra.mxu2 %v1834_v8  ;;  %v1850_v13 = vld [vmem:[%s3034_s6 + $0x1e8] sm:$0xff]  ;;  %507 = vmatpush.msra.mxu0 %v498_v6  ;;  %v1849_v15 = vld [vmem:[%s3034_s6 + $0x1e0] sm:$0xff]  ;;  %v1814_v17 = vld [vmem:[%s3034_s6 + $0xd8] sm:$0xff]  ;;  %s1688_s20 = scalar_lea.hbm %s3024_s12, %s1993_s16 }
  0x1d   : > { %641 = vmatpush.msra.mxu3 %v1851_v9  ;;  %552 = vmatpush.msra.mxu1 %v1816_v7  ;;  %v1831_v18 = vld [vmem:[%s3034_s6 + $0x158] sm:$0xff]  ;;  %v495_v20 = vld [vmem:[%s3034_s6 + $0x50] sm:$0xff]  ;;  %v494_v24 = vld [vmem:[%s3034_s6 + $0x48] sm:$0xff]  ;;  %s1691_s19 = sshll.u32 %s1688_s20, 4  ;;  %s1692_s19 = int_to_ptr.hbm [resolvable:$true] %s1691_s19 }
  0x1e   : > { %597 = vmatpush.msra.mxu2 %v1833_v12  ;;  %508 = vmatpush.msra.mxu0 %v497_v10  ;;  %v1848_v19 = vld [vmem:[%s3034_s6 + $0x1d8] sm:$0xff]  ;;  %v1813_v21 = vld [vmem:[%s3034_s6 + $0xd0] sm:$0xff]  ;;  %v1812_v25 = vld [vmem:[%s3034_s6 + $0xc8] sm:$0xff]  ;;  %s2099_s25 = sshra.s32 %s1692_s19, 4  ;;  %s2100_s25 = int_to_ptr.hbm [resolvable:$true] %s2099_s25 }
  0x1f   : > { %642 = vmatpush.msra.mxu3 %v1850_v13  ;;  %553 = vmatpush.msra.mxu1 %v1815_v11  ;;  %v1830_v22 = vld [vmem:[%s3034_s6 + $0x150] sm:$0xff]  ;;  %v1829_v26 = vld [vmem:[%s3034_s6 + $0x148] sm:$0xff]  ;;  %v493_v28 = vld [vmem:[%s3034_s6 + $0x40] sm:$0xff]  ;;  %p2106_p0 = scmp.lt.s32.totalorder %s2100_s25, %s3024_s12 }
  0x20   : > { %598 = vmatpush.msra.mxu2 %v1832_v14  ;;  %509 = vmatpush.msra.mxu0 %v496_v16  ;;  %v1847_v23 = vld [vmem:[%s3034_s6 + $0x1d0] sm:$0xff]  ;;  %v1846_v27 = vld [vmem:[%s3034_s6 + $0x1c8] sm:$0xff]  ;;  %v1811_v29 = vld [vmem:[%s3034_s6 + $0xc0] sm:$0xff] }
  0x21   : > { %643 = vmatpush.msra.mxu3 %v1849_v15  ;;  %554 = vmatpush.msra.mxu1 %v1814_v17  ;;  %v1828_v30 = vld [vmem:[%s3034_s6 + $0x140] sm:$0xff]  ;;  %v492_v32 = vld [vmem:[%s3034_s6 + $0x38] sm:$0xff]  ;;  %v491_v36 = vld [vmem:[%s3034_s6 + $0x30] sm:$0xff] }
  0x22   : > { %599 = vmatpush.msra.mxu2 %v1831_v18  ;;  %510 = vmatpush.msra.mxu0 %v495_v20  ;;  %v1845_v31 = vld [vmem:[%s3034_s6 + $0x1c0] sm:$0xff]  ;;  %v1810_v33 = vld [vmem:[%s3034_s6 + $0xb8] sm:$0xff]  ;;  %v1809_v37 = vld [vmem:[%s3034_s6 + $0xb0] sm:$0xff] }
  0x23   : > { %644 = vmatpush.msra.mxu3 %v1848_v19  ;;  %555 = vmatpush.msra.mxu1 %v1813_v21  ;;  %v1827_v34 = vld [vmem:[%s3034_s6 + $0x138] sm:$0xff]  ;;  %v1826_v38 = vld [vmem:[%s3034_s6 + $0x130] sm:$0xff]  ;;  %v490_v40 = vld [vmem:[%s3034_s6 + $0x28] sm:$0xff] }
  0x24   : > { %600 = vmatpush.msra.mxu2 %v1830_v22  ;;  %511 = vmatpush.msra.mxu0 %v494_v24  ;;  %v1844_v35 = vld [vmem:[%s3034_s6 + $0x1b8] sm:$0xff]  ;;  %v1843_v39 = vld [vmem:[%s3034_s6 + $0x1b0] sm:$0xff]  ;;  %v1808_v41 = vld [vmem:[%s3034_s6 + $0xa8] sm:$0xff] }
  0x25   : > { %645 = vmatpush.msra.mxu3 %v1847_v23  ;;  %556 = vmatpush.msra.mxu1 %v1812_v25  ;;  %v1825_v42 = vld [vmem:[%s3034_s6 + $0x128] sm:$0xff]  ;;  %v489_v44 = vld [vmem:[%s3034_s6 + $0x20] sm:$0xff]  ;;  %v488_v48 = vld [vmem:[%s3034_s6 + $0x18] sm:$0xff] }
  0x26   : > { %601 = vmatpush.msra.mxu2 %v1829_v26  ;;  %512 = vmatpush.msra.mxu0 %v493_v28  ;;  %v1842_v43 = vld [vmem:[%s3034_s6 + $0x1a8] sm:$0xff]  ;;  %v1807_v45 = vld [vmem:[%s3034_s6 + $0xa0] sm:$0xff]  ;;  %v1806_v49 = vld [vmem:[%s3034_s6 + $0x98] sm:$0xff] }
  0x27   : > { %646 = vmatpush.msra.mxu3 %v1846_v27  ;;  %557 = vmatpush.msra.mxu1 %v1811_v29  ;;  %v1824_v46 = vld [vmem:[%s3034_s6 + $0x120] sm:$0xff]  ;;  %v1823_v50 = vld [vmem:[%s3034_s6 + $0x118] sm:$0xff]  ;;  %v487_v52 = vld [vmem:[%s3034_s6 + $0x10] sm:$0xff] }
  0x28   : > { %602 = vmatpush.msra.mxu2 %v1828_v30  ;;  %513 = vmatpush.msra.mxu0 %v492_v32  ;;  %v1841_v47 = vld [vmem:[%s3034_s6 + $0x1a0] sm:$0xff]  ;;  %v1840_v51 = vld [vmem:[%s3034_s6 + $0x198] sm:$0xff]  ;;  %v1805_v53 = vld [vmem:[%s3034_s6 + $0x90] sm:$0xff] }
  0x29   : > { %647 = vmatpush.msra.mxu3 %v1845_v31  ;;  %558 = vmatpush.msra.mxu1 %v1810_v33  ;;  %v1822_v54 = vld [vmem:[%s3034_s6 + $0x110] sm:$0xff]  ;;  %v486_v56 = vld [vmem:[%s3034_s6 + $0x8] sm:$0xff]  ;;  %v485_v60 = vld [vmem:[%s3034_s6] sm:$0xff] }
  0x2a   : > { %603 = vmatpush.msra.mxu2 %v1827_v34  ;;  %514 = vmatpush.msra.mxu0 %v491_v36  ;;  %v1839_v55 = vld [vmem:[%s3034_s6 + $0x190] sm:$0xff]  ;;  %v1804_v57 = vld [vmem:[%s3034_s6 + $0x88] sm:$0xff]  ;;  %v1803_v61 = vld [vmem:[%s3034_s6 + $0x80] sm:$0xff] }
  0x2b   : > { %648 = vmatpush.msra.mxu3 %v1844_v35  ;;  %559 = vmatpush.msra.mxu1 %v1809_v37  ;;  %v1821_v58 = vld [vmem:[%s3034_s6 + $0x108] sm:$0xff]  ;;  %v678_v62 = vld [vmem:[%s3020_s8 + $0x78] sm:$0xff]  ;;  %v1820_v0 = vld [vmem:[%s3034_s6 + $0x100] sm:$0xff] }
  0x2c   : > { %604 = vmatpush.msra.mxu2 %v1826_v38  ;;  %515 = vmatpush.msra.mxu0 %v490_v40  ;;  %v1838_v59 = vld [vmem:[%s3034_s6 + $0x188] sm:$0xff]  ;;  %v1869_v63 = vld [vmem:[%s3020_s8 + $0xf8] sm:$0xff]  ;;  %v1837_v1 = vld [vmem:[%s3034_s6 + $0x180] sm:$0xff] }
  0x2d   : > { %649 = vmatpush.msra.mxu3 %v1843_v39  ;;  %560 = vmatpush.msra.mxu1 %v1808_v41  ;;  %v677_v2 = vld [vmem:[%s3020_s8 + $0x70] sm:$0xff]  ;;  %v1886_v4 = vld [vmem:[%s3020_s8 + $0x178] sm:$0xff]  ;;  %v676_v6 = vld [vmem:[%s3020_s8 + $0x68] sm:$0xff] }
  0x2e   : > { %605 = vmatpush.msra.mxu2 %v1825_v42  ;;  %516 = vmatpush.msra.mxu0 %v489_v44  ;;  %v1868_v3 = vld [vmem:[%s3020_s8 + $0xf0] sm:$0xff]  ;;  %v1903_v5 = vld [vmem:[%s3020_s8 + $0x1f8] sm:$0xff]  ;;  %v1867_v7 = vld [vmem:[%s3020_s8 + $0xe8] sm:$0xff] }
  0x2f   : > { %650 = vmatpush.msra.mxu3 %v1842_v43  ;;  %561 = vmatpush.msra.mxu1 %v1807_v45  ;;  %v1885_v8 = vld [vmem:[%s3020_s8 + $0x170] sm:$0xff]  ;;  %v675_v10 = vld [vmem:[%s3020_s8 + $0x60] sm:$0xff]  ;;  %v1884_v12 = vld [vmem:[%s3020_s8 + $0x168] sm:$0xff] }
  0x30   : > { %606 = vmatpush.msra.mxu2 %v1824_v46  ;;  %517 = vmatpush.msra.mxu0 %v488_v48  ;;  %v1902_v9 = vld [vmem:[%s3020_s8 + $0x1f0] sm:$0xff]  ;;  %v1866_v11 = vld [vmem:[%s3020_s8 + $0xe0] sm:$0xff]  ;;  %v1901_v13 = vld [vmem:[%s3020_s8 + $0x1e8] sm:$0xff] }
  0x31   : > { %651 = vmatpush.msra.mxu3 %v1841_v47  ;;  %562 = vmatpush.msra.mxu1 %v1806_v49  ;;  %v674_v14 = vld [vmem:[%s3020_s8 + $0x58] sm:$0xff]  ;;  %v1883_v16 = vld [vmem:[%s3020_s8 + $0x160] sm:$0xff]  ;;  %v673_v18 = vld [vmem:[%s3020_s8 + $0x50] sm:$0xff] }
  0x32   : > { %607 = vmatpush.msra.mxu2 %v1823_v50  ;;  %518 = vmatpush.msra.mxu0 %v487_v52  ;;  %v1865_v15 = vld [vmem:[%s3020_s8 + $0xd8] sm:$0xff]  ;;  %v1900_v17 = vld [vmem:[%s3020_s8 + $0x1e0] sm:$0xff]  ;;  %v1864_v19 = vld [vmem:[%s3020_s8 + $0xd0] sm:$0xff] }
  0x33   : > { %652 = vmatpush.msra.mxu3 %v1840_v51  ;;  %563 = vmatpush.msra.mxu1 %v1805_v53  ;;  %v1882_v20 = vld [vmem:[%s3020_s8 + $0x158] sm:$0xff]  ;;  %v672_v22 = vld [vmem:[%s3020_s8 + $0x48] sm:$0xff]  ;;  %v1881_v24 = vld [vmem:[%s3020_s8 + $0x150] sm:$0xff] }
  0x34   : > { %608 = vmatpush.msra.mxu2 %v1822_v54  ;;  %519 = vmatpush.msra.mxu0 %v486_v56  ;;  %v1899_v21 = vld [vmem:[%s3020_s8 + $0x1d8] sm:$0xff]  ;;  %v1863_v23 = vld [vmem:[%s3020_s8 + $0xc8] sm:$0xff]  ;;  %v1898_v25 = vld [vmem:[%s3020_s8 + $0x1d0] sm:$0xff] }
  0x35   : > { %653 = vmatpush.msra.mxu3 %v1839_v55  ;;  %564 = vmatpush.msra.mxu1 %v1804_v57  ;;  %v671_v26 = vld [vmem:[%s3020_s8 + $0x40] sm:$0xff]  ;;  %v1880_v28 = vld [vmem:[%s3020_s8 + $0x148] sm:$0xff]  ;;  %v670_v30 = vld [vmem:[%s3020_s8 + $0x38] sm:$0xff] }
  0x36   : > { %609 = vmatpush.msra.mxu2 %v1821_v58  ;;  %520 = vmatpush.msra.mxu0 %v485_v60  ;;  %v1862_v27 = vld [vmem:[%s3020_s8 + $0xc0] sm:$0xff]  ;;  %v1897_v29 = vld [vmem:[%s3020_s8 + $0x1c8] sm:$0xff]  ;;  %v1861_v31 = vld [vmem:[%s3020_s8 + $0xb8] sm:$0xff] }
  0x37   : > { %654 = vmatpush.msra.mxu3 %v1838_v59  ;;  %565 = vmatpush.msra.mxu1 %v1803_v61  ;;  %v1879_v32 = vld [vmem:[%s3020_s8 + $0x140] sm:$0xff]  ;;  %v669_v34 = vld [vmem:[%s3020_s8 + $0x30] sm:$0xff]  ;;  %v1878_v36 = vld [vmem:[%s3020_s8 + $0x138] sm:$0xff] }
  0x38   : > { %683 = vmatpush.msrb.mxu0 %v678_v62  ;;  %610 = vmatpush.msra.mxu2 %v1820_v0  ;;  %v1896_v33 = vld [vmem:[%s3020_s8 + $0x1c0] sm:$0xff]  ;;  %v1860_v35 = vld [vmem:[%s3020_s8 + $0xb0] sm:$0xff]  ;;  %v1895_v37 = vld [vmem:[%s3020_s8 + $0x1b8] sm:$0xff] }
  0x39   : > { %728 = vmatpush.msrb.mxu1 %v1869_v63  ;;  %655 = vmatpush.msra.mxu3 %v1837_v1  ;;  %v668_v38 = vld [vmem:[%s3020_s8 + $0x28] sm:$0xff]  ;;  %v1877_v40 = vld [vmem:[%s3020_s8 + $0x130] sm:$0xff]  ;;  %v667_v42 = vld [vmem:[%s3020_s8 + $0x20] sm:$0xff] }
  0x3a   : > { %684 = vmatpush.msrb.mxu0 %v677_v2  ;;  %773 = vmatpush.msrb.mxu2 %v1886_v4  ;;  %v1859_v39 = vld [vmem:[%s3020_s8 + $0xa8] sm:$0xff]  ;;  %v1894_v41 = vld [vmem:[%s3020_s8 + $0x1b0] sm:$0xff]  ;;  %v1858_v43 = vld [vmem:[%s3020_s8 + $0xa0] sm:$0xff] }
  0x3b   : > { %729 = vmatpush.msrb.mxu1 %v1868_v3  ;;  %818 = vmatpush.msrb.mxu3 %v1903_v5  ;;  %v1876_v44 = vld [vmem:[%s3020_s8 + $0x128] sm:$0xff]  ;;  %v666_v46 = vld [vmem:[%s3020_s8 + $0x18] sm:$0xff]  ;;  %v1875_v48 = vld [vmem:[%s3020_s8 + $0x120] sm:$0xff] }
  0x3c   : > { %685 = vmatpush.msrb.mxu0 %v676_v6  ;;  %774 = vmatpush.msrb.mxu2 %v1885_v8  ;;  %v1893_v45 = vld [vmem:[%s3020_s8 + $0x1a8] sm:$0xff]  ;;  %v1857_v47 = vld [vmem:[%s3020_s8 + $0x98] sm:$0xff]  ;;  %v1892_v49 = vld [vmem:[%s3020_s8 + $0x1a0] sm:$0xff] }
  0x3d   : > { %730 = vmatpush.msrb.mxu1 %v1867_v7  ;;  %819 = vmatpush.msrb.mxu3 %v1902_v9  ;;  %v665_v50 = vld [vmem:[%s3020_s8 + $0x10] sm:$0xff]  ;;  %v1874_v52 = vld [vmem:[%s3020_s8 + $0x118] sm:$0xff]  ;;  %v664_v54 = vld [vmem:[%s3020_s8 + $0x8] sm:$0xff] }
  0x3e   : > { %686 = vmatpush.msrb.mxu0 %v675_v10  ;;  %775 = vmatpush.msrb.mxu2 %v1884_v12  ;;  %v1856_v51 = vld [vmem:[%s3020_s8 + $0x90] sm:$0xff]  ;;  %v1891_v53 = vld [vmem:[%s3020_s8 + $0x198] sm:$0xff]  ;;  %v1855_v55 = vld [vmem:[%s3020_s8 + $0x88] sm:$0xff] }
  0x3f   : > { %731 = vmatpush.msrb.mxu1 %v1866_v11  ;;  %820 = vmatpush.msrb.mxu3 %v1901_v13  ;;  %v1873_v56 = vld [vmem:[%s3020_s8 + $0x110] sm:$0xff]  ;;  %v481_v58 = vld [vmem:[%s2642_s27] sm:$0xff]  ;;  %v1872_v61 = vld [vmem:[%s3020_s8 + $0x108] sm:$0xff] }
  0x40   : > { %687 = vmatpush.msrb.mxu0 %v674_v14  ;;  %776 = vmatpush.msrb.mxu2 %v1883_v16  ;;  %v1890_v57 = vld [vmem:[%s3020_s8 + $0x190] sm:$0xff]  ;;  %v663_v59 = vld [vmem:[%s3020_s8] sm:$0xff]  ;;  %v1889_v62 = vld [vmem:[%s3020_s8 + $0x188] sm:$0xff] }
  0x41   : > { %732 = vmatpush.msrb.mxu1 %v1865_v15  ;;  %821 = vmatpush.msrb.mxu3 %v1900_v17  ;;  %v1854_v60 = vld [vmem:[%s3020_s8 + $0x80] sm:$0xff]  ;;  %v863_v63 = vld [vmem:[%s3016_s4 + $0x78] sm:$0xff]  ;;  %v862_v3 = vld [vmem:[%s3016_s4 + $0x70] sm:$0xff] }
  0x42   : > { %688 = vmatpush.msrb.mxu0 %v673_v18  ;;  %777 = vmatpush.msrb.mxu2 %v1882_v20  ;;  %v1920_v0 = vld [vmem:[%s3016_s4 + $0xf8] sm:$0xff]  ;;  %v1871_v1 = vld [vmem:[%s3020_s8 + $0x100] sm:$0xff]  ;;  %v1919_v4 = vld [vmem:[%s3016_s4 + $0xf0] sm:$0xff] }
  0x43   : > { %733 = vmatpush.msrb.mxu1 %v1864_v19  ;;  %822 = vmatpush.msrb.mxu3 %v1899_v21  ;;  %v1888_v2 = vld [vmem:[%s3020_s8 + $0x180] sm:$0xff]  ;;  %v1937_v5 = vld [vmem:[%s3016_s4 + $0x178] sm:$0xff]  ;;  %v861_v7 = vld [vmem:[%s3016_s4 + $0x68] sm:$0xff] }
  0x44   : > { %689 = vmatpush.msrb.mxu0 %v672_v22  ;;  %778 = vmatpush.msrb.mxu2 %v1881_v24  ;;  %v1954_v6 = vld [vmem:[%s3016_s4 + $0x1f8] sm:$0xff]  ;;  %v1918_v8 = vld [vmem:[%s3016_s4 + $0xe8] sm:$0xff]  ;;  %v1936_v9 = vld [vmem:[%s3016_s4 + $0x170] sm:$0xff] }
  0x45   : > { %734 = vmatpush.msrb.mxu1 %v1863_v23  ;;  %823 = vmatpush.msrb.mxu3 %v1898_v25  ;;  %v1953_v10 = vld [vmem:[%s3016_s4 + $0x1f0] sm:$0xff]  ;;  %v860_v11 = vld [vmem:[%s3016_s4 + $0x60] sm:$0xff]  ;;  %v1935_v13 = vld [vmem:[%s3016_s4 + $0x168] sm:$0xff] }
  0x46   : > { %690 = vmatpush.msrb.mxu0 %v671_v26  ;;  %779 = vmatpush.msrb.mxu2 %v1880_v28  ;;  %v1917_v12 = vld [vmem:[%s3016_s4 + $0xe0] sm:$0xff]  ;;  %v1952_v14 = vld [vmem:[%s3016_s4 + $0x1e8] sm:$0xff]  ;;  %v859_v16 = vld [vmem:[%s3016_s4 + $0x58] sm:$0xff] }
  0x47   : > { %735 = vmatpush.msrb.mxu1 %v1862_v27  ;;  %824 = vmatpush.msrb.mxu3 %v1897_v29  ;;  %v482_v15 = vld [vmem:[%s2642_s27 + $0x8] sm:$0xff]  ;;  %v1916_v17 = vld [vmem:[%s3016_s4 + $0xd8] sm:$0xff]  ;;  %v1934_v18 = vld [vmem:[%s3016_s4 + $0x160] sm:$0xff]  ;;  %s2101_s27 = scalar_lea.hbm %s2100_s25, 16 }
  0x48   : > { %691 = vmatpush.msrb.mxu0 %v670_v30  ;;  %780 = vmatpush.msrb.mxu2 %v1879_v32  ;;  %v1951_v19 = vld [vmem:[%s3016_s4 + $0x1e0] sm:$0xff]  ;;  %v858_v20 = vld [vmem:[%s3016_s4 + $0x50] sm:$0xff]  ;;  %v1933_v22 = vld [vmem:[%s3016_s4 + $0x158] sm:$0xff]  ;;  %p2102_p11 = scmp.ne.s32.totalorder %s2100_s25, %s2101_s27 }
  0x49   : > { %736 = vmatpush.msrb.mxu1 %v1861_v31  ;;  %825 = vmatpush.msrb.mxu3 %v1896_v33  ;;  %v1915_v21 = vld [vmem:[%s3016_s4 + $0xd0] sm:$0xff]  ;;  %v1950_v23 = vld [vmem:[%s3016_s4 + $0x1d8] sm:$0xff]  ;;  %v857_v24 = vld [vmem:[%s3016_s4 + $0x48] sm:$0xff] }
  0x4a   : > { %692 = vmatpush.msrb.mxu0 %v669_v34  ;;  %781 = vmatpush.msrb.mxu2 %v1878_v36  ;;  %v1914_v25 = vld [vmem:[%s3016_s4 + $0xc8] sm:$0xff]  ;;  %v1932_v26 = vld [vmem:[%s3016_s4 + $0x150] sm:$0xff]  ;;  %v856_v28 = vld [vmem:[%s3016_s4 + $0x40] sm:$0xff]  ;;  %p2103_p12 = pnand %p2102_p11, %p2255_p5 }
  0x4b   : > { %737 = vmatpush.msrb.mxu1 %v1860_v35  ;;  %826 = vmatpush.msrb.mxu3 %v1895_v37  ;;  %v1949_v27 = vld [vmem:[%s3016_s4 + $0x1d0] sm:$0xff]  ;;  %v1913_v29 = vld [vmem:[%s3016_s4 + $0xc0] sm:$0xff]  ;;  %v1931_v30 = vld [vmem:[%s3016_s4 + $0x148] sm:$0xff] }
  0x4c   : > { %693 = vmatpush.msrb.mxu0 %v668_v38  ;;  %782 = vmatpush.msrb.mxu2 %v1877_v40  ;;  %v1948_v31 = vld [vmem:[%s3016_s4 + $0x1c8] sm:$0xff]  ;;  %v483_v32 = vld [vmem:[%s2755_s23] sm:$0xff]  ;;  %v855_v33 = vld [vmem:[%s3016_s4 + $0x38] sm:$0xff]  ;;  %p2104_p13 = pneg %p2103_p12 }
  0x4d   : > { %738 = vmatpush.msrb.mxu1 %v1859_v39  ;;  %827 = vmatpush.msrb.mxu3 %v1894_v41  ;;  %v1912_v34 = vld [vmem:[%s3016_s4 + $0xb8] sm:$0xff]  ;;  %v1930_v35 = vld [vmem:[%s3016_s4 + $0x140] sm:$0xff]  ;;  %v854_v37 = vld [vmem:[%s3016_s4 + $0x30] sm:$0xff] }
  0x4e   : > { %694 = vmatpush.msrb.mxu0 %v667_v42  ;;  %783 = vmatpush.msrb.mxu2 %v1876_v44  ;;  %v1947_v36 = vld [vmem:[%s3016_s4 + $0x1c0] sm:$0xff]  ;;  %v1911_v38 = vld [vmem:[%s3016_s4 + $0xb0] sm:$0xff]  ;;  %v1929_v39 = vld [vmem:[%s3016_s4 + $0x138] sm:$0xff] }
  0x4f   : > { %739 = vmatpush.msrb.mxu1 %v1858_v43  ;;  %828 = vmatpush.msrb.mxu3 %v1893_v45  ;;  %v1946_v40 = vld [vmem:[%s3016_s4 + $0x1b8] sm:$0xff]  ;;  %v853_v41 = vld [vmem:[%s3016_s4 + $0x28] sm:$0xff]  ;;  %v1928_v43 = vld [vmem:[%s3016_s4 + $0x130] sm:$0xff] }
  0x50   : > { %695 = vmatpush.msrb.mxu0 %v666_v46  ;;  %784 = vmatpush.msrb.mxu2 %v1875_v48  ;;  %v1910_v42 = vld [vmem:[%s3016_s4 + $0xa8] sm:$0xff]  ;;  %v1945_v44 = vld [vmem:[%s3016_s4 + $0x1b0] sm:$0xff]  ;;  %v852_v45 = vld [vmem:[%s3016_s4 + $0x20] sm:$0xff] }
  0x51   : > { %740 = vmatpush.msrb.mxu1 %v1857_v47  ;;  %829 = vmatpush.msrb.mxu3 %v1892_v49  ;;  %v1909_v46 = vld [vmem:[%s3016_s4 + $0xa0] sm:$0xff]  ;;  %v1927_v47 = vld [vmem:[%s3016_s4 + $0x128] sm:$0xff] }
  0x52   : > { %696 = vmatpush.msrb.mxu0 %v665_v50  ;;  %785 = vmatpush.msrb.mxu2 %v1874_v52  ;;  %v1944_v48 = vld [vmem:[%s3016_s4 + $0x1a8] sm:$0xff]  ;;  %v851_v50 = vld [vmem:[%s3016_s4 + $0x18] sm:$0xff]  ;;  %v1926_v52 = vld [vmem:[%s3016_s4 + $0x120] sm:$0xff] }
  0x53   : > { %741 = vmatpush.msrb.mxu1 %v1856_v51  ;;  %830 = vmatpush.msrb.mxu3 %v1891_v53  ;;  %v484_v49 = vld [vmem:[%s2755_s23 + $0x8] sm:$0xff]  ;;  %v1908_v51 = vld [vmem:[%s3016_s4 + $0x98] sm:$0xff]  ;;  %v1943_v53 = vld [vmem:[%s3016_s4 + $0x1a0] sm:$0xff]  ;;  %s2105_s23 = scalar_lea.hbm %s3024_s12, 32 }
  0x54   : > { %697 = vmatpush.msrb.mxu0 %v664_v54  ;;  %786 = vmatpush.msrb.mxu2 %v1873_v56  ;;  %v850_v54 = vld [vmem:[%s3016_s4 + $0x10] sm:$0xff]  ;;  %v1925_v56 = vld [vmem:[%s3016_s4 + $0x118] sm:$0xff]  ;;  %p2107_p1 = scmp.lt.s32.totalorder %s2105_s23, %s2101_s27 }
  0x55   : > { %742 = vmatpush.msrb.mxu1 %v1855_v55  ;;  %831 = vmatpush.msrb.mxu3 %v1890_v57  ;;  %v1907_v55 = vld [vmem:[%s3016_s4 + $0x90] sm:$0xff]  ;;  %v1942_v57 = vld [vmem:[%s3016_s4 + $0x198] sm:$0xff] }
  0x56   : > { %521 = vmatmul.f32.vlgmr.msra.gmra.mxu0 %v481_v58  ;;  %566 = vmatmul.f32.vlgmr.msra.gmra.mxu1 %v481_v58  ;;  %p2108_p2 = por %p2107_p1, %p2106_p0 }
  0x57   : > { %698 = vmatpush.msrb.mxu0 %v663_v59  ;;  %743 = vmatpush.msrb.mxu1 %v1854_v60  ;;  %v1906_v59 = vld [vmem:[%s3016_s4 + $0x88] sm:$0xff]  ;;  %v1924_v60 = vld [vmem:[%s3016_s4 + $0x110] sm:$0xff] }
  0x58   : > { %787 = vmatpush.msrb.mxu2 %v1872_v61  ;;  %832 = vmatpush.msrb.mxu3 %v1889_v62  ;;  %v1941_v61 = vld [vmem:[%s3016_s4 + $0x190] sm:$0xff]  ;;  %v848_v62 = vld [vmem:[%s3016_s4] sm:$0xff]  ;;  %p2109_p3 = pnand %p2108_p2, %p2104_p13 }
  0x59   : > { %868 = vmatpush.msra.mxu0 %v863_v63  ;;  %913 = vmatpush.msra.mxu1 %v1920_v0  ;;  %v1905_v63 = vld [vmem:[%s3016_s4 + $0x80] sm:$0xff]  ;;  %v1923_v0 = vld [vmem:[%s3016_s4 + $0x108] sm:$0xff] }
  0x5a   : > { %611 = vmatmul.f32.vlgmr.msra.gmra.mxu2 %v481_v58  ;;  %656 = vmatmul.f32.vlgmr.msra.gmra.mxu3 %v481_v58  ;;  %v849_v58 = vld [vmem:[%s3016_s4 + $0x8] sm:$0xff] }
  0x5b   : > { %788 = vmatpush.msrb.mxu2 %v1871_v1  ;;  %833 = vmatpush.msrb.mxu3 %v1888_v2  ;;  %v1940_v1 = vld [vmem:[%s3016_s4 + $0x188] sm:$0xff]  ;;  %v846_v2 = vld [vmem:[%s460_s15] sm:$0xff] }
  0x5c   : > { %869 = vmatpush.msra.mxu0 %v862_v3  ;;  %914 = vmatpush.msra.mxu1 %v1919_v4  ;;  %v1922_v3 = vld [vmem:[%s3016_s4 + $0x100] sm:$0xff] }
  0x5d   : > { %958 = vmatpush.msra.mxu2 %v1937_v5  ;;  %1003 = vmatpush.msra.mxu3 %v1954_v6  ;;  %v1939_v4 = vld [vmem:[%s3016_s4 + $0x180] sm:$0xff]  ;;  %v847_v5 = vld [vmem:[%s460_s15 + $0x8] sm:$0xff] }
  0x5e   : > { %870 = vmatpush.msra.mxu0 %v861_v7  ;;  %915 = vmatpush.msra.mxu1 %v1918_v8  ;;  %v2040_v6 = vld [vmem:[%s3019_s7] ss:$0 sm:$0xff]  ;;  %v2041_v7 = vld [vmem:[%s3019_s7 + $0x1] ss:$0 sm:$0xff] }
  0x5f   : > { %959 = vmatpush.msra.mxu2 %v1936_v9  ;;  %1004 = vmatpush.msra.mxu3 %v1953_v10 }
  0x60   : > { %871 = vmatpush.msra.mxu0 %v860_v11  ;;  %916 = vmatpush.msra.mxu1 %v1917_v12  ;;  %v2042_v12 = vld [vmem:[%s3019_s7 + $0x2] ss:$0 sm:$0xff] }
  0x61   : > { %960 = vmatpush.msra.mxu2 %v1935_v13  ;;  %1005 = vmatpush.msra.mxu3 %v1952_v14  ;;  %v2043_v13 = vld [vmem:[%s3019_s7 + $0x3] ss:$0 sm:$0xff] }
  0x62   : > { %524 = vmatmul.f32.gmra.mxu0 %v482_v15  ;;  %569 = vmatmul.f32.gmra.mxu1 %v482_v15 }
  0x63   : > { %872 = vmatpush.msra.mxu0 %v859_v16  ;;  %917 = vmatpush.msra.mxu1 %v1916_v17 }
  0x64   : > { %961 = vmatpush.msra.mxu2 %v1934_v18  ;;  %1006 = vmatpush.msra.mxu3 %v1951_v19 }
  0x65   : > { %614 = vmatmul.f32.gmra.mxu2 %v482_v15  ;;  %659 = vmatmul.f32.gmra.mxu3 %v482_v15 }
  0x66   : > { %873 = vmatpush.msra.mxu0 %v858_v20  ;;  %918 = vmatpush.msra.mxu1 %v1915_v21 }
  0x67   : > { %962 = vmatpush.msra.mxu2 %v1933_v22  ;;  %1007 = vmatpush.msra.mxu3 %v1950_v23 }
  0x68   : > { %874 = vmatpush.msra.mxu0 %v857_v24  ;;  %919 = vmatpush.msra.mxu1 %v1914_v25 }
  0x69   : > { %963 = vmatpush.msra.mxu2 %v1932_v26  ;;  %1008 = vmatpush.msra.mxu3 %v1949_v27 }
  0x6a   : > { %875 = vmatpush.msra.mxu0 %v856_v28  ;;  %920 = vmatpush.msra.mxu1 %v1913_v29 }
  0x6b   : > { %964 = vmatpush.msra.mxu2 %v1931_v30  ;;  %1009 = vmatpush.msra.mxu3 %v1948_v31 }
  0x6c   : > { %699 = vmatmul.f32.vlgmr.msrb.gmra.mxu0 %v483_v32  ;;  %744 = vmatmul.f32.vlgmr.msrb.gmra.mxu1 %v483_v32 }
  0x6d   : > { %876 = vmatpush.msra.mxu0 %v855_v33  ;;  %921 = vmatpush.msra.mxu1 %v1912_v34  ;;  %v2049_v33 = vld [vmem:[%s3017_s5 + $0x1] ss:$0 sm:$0xff]  ;;  %v2044_v34 = vld [vmem:[%s3021_s9] ss:$0 sm:$0xff] }
  0x6e   : > { %965 = vmatpush.msra.mxu2 %v1930_v35  ;;  %1010 = vmatpush.msra.mxu3 %v1947_v36  ;;  %v2045_v35 = vld [vmem:[%s3021_s9 + $0x1] ss:$0 sm:$0xff] }
  0x6f   : > { %789 = vmatmul.f32.vlgmr.msrb.gmra.mxu2 %v483_v32  ;;  %834 = vmatmul.f32.vlgmr.msrb.gmra.mxu3 %v483_v32  ;;  %v2048_v32 = vld [vmem:[%s3017_s5] ss:$0 sm:$0xff] }
  0x70   : > { %877 = vmatpush.msra.mxu0 %v854_v37  ;;  %922 = vmatpush.msra.mxu1 %v1911_v38 }
  0x71   : > { %966 = vmatpush.msra.mxu2 %v1929_v39  ;;  %1011 = vmatpush.msra.mxu3 %v1946_v40 }
  0x72   : > { %878 = vmatpush.msra.mxu0 %v853_v41  ;;  %923 = vmatpush.msra.mxu1 %v1910_v42 }
  0x73   : > { %967 = vmatpush.msra.mxu2 %v1928_v43  ;;  %1012 = vmatpush.msra.mxu3 %v1945_v44  ;;  %v2050_v44 = vld [vmem:[%s3017_s5 + $0x2] ss:$0 sm:$0xff] }
  0x74   : > { %879 = vmatpush.msra.mxu0 %v852_v45  ;;  %924 = vmatpush.msra.mxu1 %v1909_v46  ;;  %v2051_v45 = vld [vmem:[%s3017_s5 + $0x3] ss:$0 sm:$0xff]  ;;  %v2046_v46 = vld [vmem:[%s3021_s9 + $0x2] ss:$0 sm:$0xff] }
  0x75   : > { %968 = vmatpush.msra.mxu2 %v1927_v47  ;;  %1013 = vmatpush.msra.mxu3 %v1944_v48  ;;  %v2047_v47 = vld [vmem:[%s3021_s9 + $0x3] ss:$0 sm:$0xff] }
  0x76   : > { %702 = vmatmul.f32.gmra.mxu0 %v484_v49  ;;  %747 = vmatmul.f32.gmra.mxu1 %v484_v49 }
  0x77   : > { %880 = vmatpush.msra.mxu0 %v851_v50  ;;  %925 = vmatpush.msra.mxu1 %v1908_v51 }
  0x78   : > { %969 = vmatpush.msra.mxu2 %v1926_v52  ;;  %1014 = vmatpush.msra.mxu3 %v1943_v53 }
  0x79   : > { %792 = vmatmul.f32.gmra.mxu2 %v484_v49  ;;  %837 = vmatmul.f32.gmra.mxu3 %v484_v49 }
  0x7a   : > { %881 = vmatpush.msra.mxu0 %v850_v54  ;;  %926 = vmatpush.msra.mxu1 %v1907_v55 }
  0x7b   : > { %970 = vmatpush.msra.mxu2 %v1925_v56  ;;  %1015 = vmatpush.msra.mxu3 %v1942_v57 }
  0x7c   : > { %882 = vmatpush.msra.mxu0 %v849_v58  ;;  %927 = vmatpush.msra.mxu1 %v1906_v59 }
  0x7d   : > { %971 = vmatpush.msra.mxu2 %v1924_v60  ;;  %1016 = vmatpush.msra.mxu3 %v1941_v61 }
  0x7e   : > { %883 = vmatpush.msra.mxu0 %v848_v62  ;;  %928 = vmatpush.msra.mxu1 %v1905_v63 }
  0x7f   : > { %972 = vmatpush.msra.mxu2 %v1923_v0  ;;  %1017 = vmatpush.msra.mxu3 %v1940_v1 }
  0x80   : > { %884 = vmatmul.f32.vlgmr.msra.gmra.mxu0 %v846_v2  ;;  %929 = vmatmul.f32.vlgmr.msra.gmra.mxu1 %v846_v2 }
  0x81   : > { %973 = vmatpush.msra.mxu2 %v1922_v3  ;;  %1018 = vmatpush.msra.mxu3 %v1939_v4 }
  0x82   : > { %974 = vmatmul.f32.vlgmr.msra.gmra.mxu2 %v846_v2  ;;  %1019 = vmatmul.f32.vlgmr.msra.gmra.mxu3 %v846_v2  ;;  %v1995_v2 = vld [vmem:[%s478_s17] sm:$0xf]   ;;  %s455_s17 = scalar_lea.vmem [#allocation2], %s1794_s29 }
  0x83   : > { %v1996_v3 = vunpack.c.0.s8 %v1995_v2  ;;  %v1997_v4 = vunpack.c.1.s8 %v1995_v2  ;;  %s1689_s26 = sshll.u32 %s455_s17, 4  ;;  %s1690_s26 = int_to_ptr.vmem [resolvable:$true] %s1689_s26 }
  0x85   : > { %vm1239_vm1 = vcmp.eq.s32.totalorder %v1996_v3, 0  ;;  %vm1240_vm2 = vcmp.eq.s32.totalorder %v1997_v4, 0 }
  0x88   : > { %887 = vmatmul.f32.gmra.mxu0 %v847_v5  ;;  %932 = vmatmul.f32.gmra.mxu1 %v847_v5 }
  0x8a   : > { %977 = vmatmul.f32.gmra.mxu2 %v847_v5  ;;  %1022 = vmatmul.f32.gmra.mxu3 %v847_v5 }
  0xd3   : > { %v522_v8 = vpop.f32.mrf.mxu0  ;;  %v567_v9 = vpop.f32.mrf.mxu1 }
  0xd4   : > { %v523_v10 = vadd.f32 %v2040_v6, %v522_v8  ;;  %v568_v11 = vadd.f32 %v2041_v7, %v567_v9 }
  0xd6   : > { %1960 = vmatpush.xpose.msk.msrb.mxu2 %vm1026_vm0, %v568_v11  ;;  %1956 = vmatpush.xpose.msk.msrb.mxu0 %vm1026_vm0, %v523_v10 }
  0xdd   : > { %v612_v14 = vpop.f32.mrf.mxu2  ;;  %v657_v15 = vpop.f32.mrf.mxu3 }
  0xde   : > { %v613_v16 = vadd.f32 %v2042_v12, %v612_v14  ;;  %v658_v17 = vadd.f32 %v2043_v13, %v657_v15 }
  0xdf   : > { %v525_v18 = vpop.f32.mrf.mxu0  ;;  %v570_v19 = vpop.f32.mrf.mxu1 }
  0xe0   : > { %v526_v20 = vadd.f32 %v2040_v6, %v525_v18  ;;  %v571_v21 = vadd.f32 %v2041_v7, %v570_v19  ;;  %1968 = vmatpush.xpose.msk.msra.mxu2 %vm1026_vm0, %v658_v17  ;;  %1964 = vmatpush.xpose.msk.msra.mxu0 %vm1026_vm0, %v613_v16  ;;  %v2149_v6 = vmov 0.0  }
  0xe1   : > { %v1241_v7 = vsel %vm1239_vm1, -1e+09, %v2149_v6  ;;  %v1242_v9 = vsel %vm1240_vm2, -1e+09, %v2149_v6 }
  0xe2   : > { %1962 = vmatpush.xpose.msk.msrb.mxu3 %vm1026_vm0, %v571_v21  ;;  %1958 = vmatpush.xpose.msk.msrb.mxu1 %vm1026_vm0, %v526_v20 }
  0xe8   : > { %v615_v22 = vpop.f32.mrf.mxu2  ;;  %v660_v23 = vpop.f32.mrf.mxu3 }
  0xe9   : > { %v616_v24 = vadd.f32 %v2042_v12, %v615_v22  ;;  %v661_v25 = vadd.f32 %v2043_v13, %v660_v23  ;;  %v700_v26 = vpop.f32.mrf.mxu0  ;;  %v745_v27 = vpop.f32.mrf.mxu1 }
  0xea   : > { %v701_v42 = vadd.f32 %v2044_v34, %v700_v26  ;;  %v746_v43 = vadd.f32 %v2045_v35, %v745_v27 }
  0xeb   : > { %1970 = vmatpush.xpose.msk.msra.mxu3 %vm1026_vm0, %v661_v25  ;;  %1966 = vmatpush.xpose.msk.msra.mxu1 %vm1026_vm0, %v616_v24 }
  0xf2   : > { %v790_v28 = vpop.f32.mrf.mxu2  ;;  %v835_v29 = vpop.f32.mrf.mxu3 }
  0xf3   : > { %v703_v30 = vpop.f32.mrf.mxu0  ;;  %v748_v31 = vpop.f32.mrf.mxu1  ;;  %v791_v58 = vadd.f32 %v2046_v46, %v790_v28  ;;  %v836_v59 = vadd.f32 %v2047_v47, %v835_v29 }
  0xf4   : > { %v704_v56 = vadd.f32 %v2044_v34, %v703_v30  ;;  %v749_v57 = vadd.f32 %v2045_v35, %v748_v31 }
  0xfc   : > { %v793_v36 = vpop.f32.mrf.mxu2  ;;  %v838_v37 = vpop.f32.mrf.mxu3 }
  0xfd   : > { %v885_v38 = vpop.f32.mrf.mxu0  ;;  %v930_v39 = vpop.f32.mrf.mxu1  ;;  %v794_v0 = vadd.f32 %v2046_v46, %v793_v36  ;;  %v839_v1 = vadd.f32 %v2047_v47, %v838_v37 }
  0xfe   : > { %v886_v40 = vadd.f32 %v2048_v32, %v885_v38  ;;  %v931_v41 = vadd.f32 %v2049_v33, %v930_v39 }
 0x100   : > { %1957 = vmatmul.msk.f32.vlgmr.msrb.gmra.mxu0 %vm1026_vm0, %v886_v40  ;;  %1961 = vmatmul.msk.f32.vlgmr.msrb.gmra.mxu2 %vm1026_vm0, %v931_v41 }
 0x101   : > { %1373 = vmatpush.msrb.mxu0 %v701_v42  ;;  %1419 = vmatpush.msrb.mxu2 %v746_v43 }
 0x105   : > { %v888_v48 = vpop.f32.mrf.mxu0  ;;  %v933_v49 = vpop.f32.mrf.mxu1 }
 0x106   : > { %v889_v50 = vadd.f32 %v2048_v32, %v888_v48  ;;  %v934_v51 = vadd.f32 %v2049_v33, %v933_v49  ;;  %v975_v52 = vpop.f32.mrf.mxu2  ;;  %v1020_v53 = vpop.f32.mrf.mxu3 }
 0x107   : > { %v976_v54 = vadd.f32 %v2050_v44, %v975_v52  ;;  %v1021_v55 = vadd.f32 %v2051_v45, %v1020_v53 }
 0x108   : > { %1959 = vmatmul.msk.f32.vlgmr.msrb.gmra.mxu1 %vm1026_vm0, %v889_v50  ;;  %1963 = vmatmul.msk.f32.vlgmr.msrb.gmra.mxu3 %vm1026_vm0, %v934_v51 }
 0x109   : > { %1965 = vmatmul.msk.f32.vlgmr.msra.gmra.mxu0 %vm1026_vm0, %v976_v54  ;;  %1969 = vmatmul.msk.f32.vlgmr.msra.gmra.mxu2 %vm1026_vm0, %v1021_v55 }
 0x10a   : > { %1396 = vmatpush.msrb.mxu1 %v704_v56  ;;  %1442 = vmatpush.msrb.mxu3 %v749_v57 }
 0x10b   : > { %1465 = vmatpush.msra.mxu0 %v791_v58  ;;  %1511 = vmatpush.msra.mxu2 %v836_v59 }
 0x10e   : > { %v978_v60 = vpop.f32.mrf.mxu2  ;;  %v1023_v61 = vpop.f32.mrf.mxu3 }
 0x10f   : > { %v979_v62 = vadd.f32 %v2050_v44, %v978_v60  ;;  %v1024_v63 = vadd.f32 %v2051_v45, %v1023_v61 }
 0x111   : > { %1967 = vmatmul.msk.f32.vlgmr.msra.gmra.mxu1 %vm1026_vm0, %v979_v62  ;;  %1971 = vmatmul.msk.f32.vlgmr.msra.gmra.mxu3 %vm1026_vm0, %v1024_v63 }
 0x112   : > { %1488 = vmatpush.msra.mxu1 %v794_v0  ;;  %1534 = vmatpush.msra.mxu3 %v839_v1 }
 0x17d   : > { %v1050_v5 = vpop.f32.mrf.mxu0 }
 0x17e   : > { %v1243_v16 = vadd.f32 %v1241_v7, %v1050_v5 }
 0x180   : > { %v1251_v22 = vsel %vm1026_vm0, %v1243_v16, -inf }
 0x183   : > { %v1102_v8 = vpop.f32.mrf.mxu2 }
 0x184   : > { %v1245_v10 = vadd.f32 %v1241_v7, %v1102_v8  ;;  %v841_v8 = vld [vmem:[%s3022_s10] sm:$0xff] }
 0x185   : > { %v1076_v11 = vpop.f32.mrf.mxu1 }
 0x186   : > { %v1244_v12 = vadd.f32 %v1242_v9, %v1076_v11  ;;  %v1257_v13 = vsel %vm1026_vm0, %v1245_v10, -inf  ;;  %v1154_v14 = vpop.f32.mrf.mxu0  ;;  %v842_v11 = vld [vmem:[%s3022_s10 + $0x8] sm:$0xff] }
 0x187   : > { %1258 = vmax.xlane.f32.xlu0 %v1257_v13  ;;  %v1247_v17 = vadd.f32 %v1241_v7, %v1154_v14 }
 0x188   : > { %v1254_v15 = vsel %vm1026_vm0, %v1244_v12, -inf }
 0x189   : > { %1255 = vmax.xlane.f32.xlu2 %v1254_v15  ;;  %v1263_v23 = vsel %vm1026_vm0, %v1247_v17, -inf }
 0x18b   : > { %v1128_v18 = vpop.f32.mrf.mxu3 }
 0x18c   : > { %v1246_v19 = vadd.f32 %v1242_v9, %v1128_v18  ;;  %v1206_v20 = vpop.f32.mrf.mxu2 }
 0x18d   : > { %v1249_v24 = vadd.f32 %v1241_v7, %v1206_v20 }
 0x18e   : > { %v1260_v21 = vsel %vm1026_vm0, %v1246_v19, -inf  ;;  %v1180_v28 = vpop.f32.mrf.mxu1 }
 0x18f   : > { %1261 = vmax.xlane.f32.xlu1 %v1260_v21  ;;  %1252 = vmax.xlane.f32.xlu0 %v1251_v22  ;;  %v1269_v26 = vsel %vm1026_vm0, %v1249_v24, -inf  ;;  %v1248_v30 = vadd.f32 %v1242_v9, %v1180_v28 }
 0x191   : > { %1264 = vmax.xlane.f32.xlu2 %v1263_v23  ;;  %v1266_v31 = vsel %vm1026_vm0, %v1248_v30, -inf }
 0x194   : > { %v1232_v25 = vpop.f32.mrf.mxu3 }
 0x195   : > { %v1250_v27 = vadd.f32 %v1242_v9, %v1232_v25  ;;  %v843_v9 = vld [vmem:[%s3022_s10 + $0x10] sm:$0xff] }
 0x197   : > { %1270 = vmax.xlane.f32.xlu1 %v1269_v26  ;;  %v1272_v29 = vsel %vm1026_vm0, %v1250_v27, -inf }
 0x198   : > { %1273 = vmax.xlane.f32.xlu0 %v1272_v29 }
 0x19f   : > { %1267 = vmax.xlane.f32.xlu1 %v1266_v31 }
 0x1fa   : > { %v1259_v32 = vpop.xlane.xlu0 %1258 }
 0x1fb   : > { %v1277_v33 = vsub.f32 %v1245_v10, %v1259_v32  ;;  %v844_v10 = vld [vmem:[%s3022_s10 + $0x18] sm:$0xff] }
 0x1fc   : > { %v1256_v34 = vpop.xlane.xlu2 %1255 }
 0x1fd   : > { %v1287_v35 = vmul.f32 1.442695, %v1277_v33  ;;  %v1276_v36 = vsub.f32 %v1244_v12, %v1256_v34 }
 0x1ff   : > { %2053 = vpow2.f32 %v1287_v35  ;;  %v1285_v37 = vmul.f32 1.442695, %v1276_v36 }
 0x201   : > { %2055 = vpow2.f32 %v1285_v37 }
 0x202   : > { %v1262_v38 = vpop.xlane.xlu1 %1261  ;;  %v1253_v39 = vpop.xlane.xlu0 %1252 }
 0x203   : > { %v1278_v40 = vsub.f32 %v1246_v19, %v1262_v38  ;;  %v1275_v41 = vsub.f32 %v1243_v16, %v1253_v39 }
 0x204   : > { %v1265_v42 = vpop.xlane.xlu2 %1264 }
 0x205   : > { %v2054_v43 = vpop.eup %2053  ;;  %v1289_v44 = vmul.f32 1.442695, %v1278_v40  ;;  %v1283_v45 = vmul.f32 1.442695, %v1275_v41  ;;  %v1279_v46 = vsub.f32 %v1247_v17, %v1265_v42 }
 0x206   : > { %1974 = vmatmul.msk.f32.vlgmr.msrb.gmra.mxu2 %vm1026_vm0, %v2054_v43  ;;  %v1305_v3 = vsel %vm1026_vm0, %v2054_v43, 0.0 }
 0x207   : > { %v2056_v47 = vpop.eup %2055  ;;  %2057 = vpow2.f32 %v1289_v44  ;;  %v1291_v48 = vmul.f32 1.442695, %v1279_v46  ;;  %1626 = vmatpush.msrb.mxu2 %v843_v9  ;;  %v2052_v9 = vld [vmem:[%s3023_s11] ss:$0 sm:$0xff] }
 0x208   : > { %2059 = vpow2.f32 %v1283_v45  ;;  %1973 = vmatmul.msk.f32.vlgmr.msrb.gmra.mxu1 %vm1026_vm0, %v2056_v47  ;;  %v1302_v6 = vsel %vm1026_vm0, %v2056_v47, 0.0 }
 0x209   : > { %2061 = vpow2.f32 %v1291_v48  ;;  %1597 = vmatpush.msrb.mxu1 %v842_v11 }
 0x20a   : > { %v1271_v49 = vpop.xlane.xlu1 %1270 }
 0x20b   : > { %v1281_v50 = vsub.f32 %v1249_v24, %v1271_v49  ;;  %v1274_v51 = vpop.xlane.xlu0 %1273 }
 0x20c   : > { %v1282_v52 = vsub.f32 %v1250_v27, %v1274_v51 }
 0x20d   : > { %v2058_v53 = vpop.eup %2057  ;;  %v1295_v54 = vmul.f32 1.442695, %v1281_v50 }
 0x20e   : > { %v2060_v55 = vpop.eup %2059  ;;  %v1297_v56 = vmul.f32 1.442695, %v1282_v52  ;;  %1975 = vmatmul.msk.f32.vlgmr.msrb.gmra.mxu3 %vm1026_vm0, %v2058_v53  ;;  %v1308_v7 = vsel %vm1026_vm0, %v2058_v53, 0.0 }
 0x20f   : > { %v2062_v57 = vpop.eup %2061  ;;  %2063 = vpow2.f32 %v1295_v54  ;;  %1972 = vmatmul.msk.f32.vlgmr.msrb.gmra.mxu0 %vm1026_vm0, %v2060_v55  ;;  %v1299_v58 = vsel %vm1026_vm0, %v2060_v55, 0.0  ;;  %1655 = vmatpush.msrb.mxu3 %v844_v10 }
 0x210   : > { %2065 = vpow2.f32 %v1297_v56  ;;  %1300 = vadd.xlane.f32.xlu1 %v1299_v58  ;;  %v1311_v59 = vsel %vm1026_vm0, %v2062_v57, 0.0  ;;  %1568 = vmatpush.msrb.mxu0 %v841_v8 }
 0x211   : > { %1312 = vadd.xlane.f32.xlu2 %v1311_v59 }
 0x212   : > { %v1268_v60 = vpop.xlane.xlu1 %1267 }
 0x213   : > { %v1280_v61 = vsub.f32 %v1248_v30, %v1268_v60 }
 0x215   : > { %v2064_v62 = vpop.eup %2063  ;;  %v1293_v63 = vmul.f32 1.442695, %v1280_v61 }
 0x216   : > { %v2066_v0 = vpop.eup %2065  ;;  %1978 = vmatmul.msk.f32.vlgmr.msra.gmra.mxu2 %vm1026_vm0, %v2064_v62  ;;  %v1317_v1 = vsel %vm1026_vm0, %v2064_v62, 0.0 }
 0x217   : > { %2067 = vpow2.f32 %v1293_v63  ;;  %1976 = vmatmul.msk.f32.vlgmr.msra.gmra.mxu0 %vm1026_vm0, %v2062_v57  ;;  %1979 = vmatmul.msk.f32.vlgmr.msra.gmra.mxu3 %vm1026_vm0, %v2066_v0  ;;  %v1320_v2 = vsel %vm1026_vm0, %v2066_v0, 0.0 }
 0x218   : > { %1318 = vadd.xlane.f32.xlu0 %v1317_v1  ;;  %1321 = vadd.xlane.f32.xlu1 %v1320_v2 }
 0x219   : > { %1306 = vadd.xlane.f32.xlu2 %v1305_v3 }
 0x21d   : > { %v2068_v4 = vpop.eup %2067 }
 0x21e   : > { %1977 = vmatmul.msk.f32.vlgmr.msra.gmra.mxu1 %vm1026_vm0, %v2068_v4  ;;  %v1314_v5 = vsel %vm1026_vm0, %v2068_v4, 0.0 }
 0x220   : > { %1315 = vadd.xlane.f32.xlu0 %v1314_v5 }
 0x221   : > { %1303 = vadd.xlane.f32.xlu2 %v1302_v6 }
 0x228   : > { %1309 = vadd.xlane.f32.xlu0 %v1308_v7 }
 0x283   : > { %v1301_v12 = vpop.xlane.xlu1 %1300 }
 0x284   : > { %2069 = vrcp.f32 %v1301_v12  ;;  %v1313_v13 = vpop.xlane.xlu2 %1312 }
 0x285   : > { %2071 = vrcp.f32 %v1313_v13  ;;  %v1398_v40 = vpop.f32.mrf.mxu1 }
 0x289   : > { %v1421_v25 = vpop.f32.mrf.mxu2 }
 0x28a   : > { %v2070_v14 = vpop.eup %2069 }
 0x28b   : > { %v2072_v15 = vpop.eup %2071  ;;  %v1331_v16 = vmul.f32 %v2070_v14, %v1301_v12  ;;  %v1322_v17 = vpop.xlane.xlu1 %1321 }
 0x28c   : > { %v1319_v18 = vpop.xlane.xlu0 %1318  ;;  %v1335_v19 = vmul.f32 %v2072_v15, %v1313_v13  ;;  %v1375_v20 = vpop.f32.mrf.mxu0 }
 0x28d   : > { %v1307_v21 = vpop.xlane.xlu2 %1306  ;;  %v1339_v22 = vsub.f32 2.0, %v1331_v16  ;;  %2073 = vrcp.f32 %v1319_v18 }
 0x28e   : > { %2075 = vrcp.f32 %v1307_v21  ;;  %v1343_v23 = vsub.f32 2.0, %v1335_v19 }
 0x28f   : > { %2077 = vrcp.f32 %v1322_v17  ;;  %v1347_v24 = vmul.f32 %v2070_v14, %v1339_v22 }
 0x290   : > { %v1351_v29 = vmul.f32 %v2072_v15, %v1343_v23 }
 0x291   : > { %v1539_v26 = vmul.f32 %v1375_v20, %v1347_v24  ;;  %v1444_v36 = vpop.f32.mrf.mxu3 }
 0x293   : > { %v2074_v27 = vpop.eup %2073  ;;  %1980 = vmatmul.msk.f32.vlgmr.msrb.gmra.mxu0 %vm1026_vm0, %v1539_v26 }
 0x294   : > { %v1316_v28 = vpop.xlane.xlu0 %1315  ;;  %v2076_v30 = vpop.eup %2075  ;;  %v1337_v31 = vmul.f32 %v2074_v27, %v1319_v18 }
 0x295   : > { %2079 = vrcp.f32 %v1316_v28  ;;  %v1467_v32 = vpop.f32.mrf.mxu0  ;;  %v1304_v33 = vpop.xlane.xlu2 %1303  ;;  %v1333_v35 = vmul.f32 %v2076_v30, %v1307_v21 }
 0x296   : > { %v2078_v34 = vpop.eup %2077  ;;  %v1543_v37 = vmul.f32 %v1467_v32, %v1351_v29  ;;  %2081 = vrcp.f32 %v1304_v33  ;;  %v1345_v38 = vsub.f32 2.0, %v1337_v31 }
 0x297   : > { %v1341_v39 = vsub.f32 2.0, %v1333_v35  ;;  %v1338_v41 = vmul.f32 %v2078_v34, %v1322_v17 }
 0x298   : > { %1984 = vmatmul.msk.f32.vlgmr.msrb.gmra.mxu2 %vm1026_vm0, %v1543_v37  ;;  %v1353_v42 = vmul.f32 %v2074_v27, %v1345_v38 }
 0x299   : > { %v1349_v43 = vmul.f32 %v2076_v30, %v1341_v39  ;;  %v1513_v44 = vpop.f32.mrf.mxu2  ;;  %v1346_v51 = vsub.f32 2.0, %v1338_v41 }
 0x29a   : > { %v1545_v46 = vmul.f32 %v1513_v44, %v1353_v42  ;;  %v1536_v55 = vpop.f32.mrf.mxu3 }
 0x29b   : > { %v2080_v45 = vpop.eup %2079  ;;  %v1541_v48 = vmul.f32 %v1421_v25, %v1349_v43  ;;  %v1354_v58 = vmul.f32 %v2078_v34, %v1346_v51  ;;  %v1490_v59 = vpop.f32.mrf.mxu1 }
 0x29c   : > { %v2082_v47 = vpop.eup %2081  ;;  %v1336_v49 = vmul.f32 %v2080_v45, %v1316_v28  ;;  %v1310_v50 = vpop.xlane.xlu0 %1309  ;;  %1986 = vmatmul.msk.f32.vlgmr.msrb.gmra.mxu3 %vm1026_vm0, %v1545_v46 }
 0x29d   : > { %v1332_v52 = vmul.f32 %v2082_v47, %v1304_v33  ;;  %2083 = vrcp.f32 %v1310_v50  ;;  %1982 = vmatmul.msk.f32.vlgmr.msrb.gmra.mxu1 %vm1026_vm0, %v1541_v48  ;;  %v1546_v62 = vmul.f32 %v1536_v55, %v1354_v58 }
 0x29e   : > { %v1344_v53 = vsub.f32 2.0, %v1336_v49 }
 0x29f   : > { %v1340_v54 = vsub.f32 2.0, %v1332_v52 }
 0x2a0   : > { %v1352_v56 = vmul.f32 %v2080_v45, %v1344_v53 }
 0x2a1   : > { %v1348_v57 = vmul.f32 %v2082_v47, %v1340_v54 }
 0x2a2   : > { %v1544_v60 = vmul.f32 %v1490_v59, %v1352_v56 }
 0x2a3   : > { %v2084_v61 = vpop.eup %2083  ;;  %v1540_v63 = vmul.f32 %v1398_v40, %v1348_v57 }
 0x2a4   : > { %v1334_v0 = vmul.f32 %v2084_v61, %v1310_v50  ;;  %1985 = vmatmul.msk.f32.gmra.mxu2 %vm1026_vm0, %v1544_v60  ;;  %1987 = vmatmul.msk.f32.gmra.mxu3 %vm1026_vm0, %v1546_v62 }
 0x2a5   : > { %1981 = vmatmul.msk.f32.gmra.mxu0 %vm1026_vm0, %v1540_v63 }
 0x2a6   : > { %v1342_v1 = vsub.f32 2.0, %v1334_v0 }
 0x2a8   : > { %v1350_v2 = vmul.f32 %v2084_v61, %v1342_v1 }
 0x2aa   : > { %v1542_v3 = vmul.f32 %v1444_v36, %v1350_v2 }
 0x2ac   : > { %1983 = vmatmul.msk.f32.gmra.mxu1 %vm1026_vm0, %v1542_v3 }
 0x310   : > { %v1570_v4 = vpop.f32.mrf.mxu0 }
 0x31a   : > { %v1599_v5 = vpop.f32.mrf.mxu1 }
 0x31b   : > { %v1663_v6 = vadd.f32 %v1599_v5, %v1570_v4  ;;  %v1628_v7 = vpop.f32.mrf.mxu2 }
 0x31d   : > { %v1664_v8 = vadd.f32 %v1663_v6, %v1628_v7 }
 0x31f   : > { %v1657_v10 = vpop.f32.mrf.mxu3 }
 0x320   : > { %v1665_v11 = vadd.f32 %v1664_v8, %v1657_v10 }
 0x322   : > { %v1672_v12 = vadd.f32 %v2052_v9, %v1665_v11  ;;  %v1573_v13 = vpop.f32.mrf.mxu0 }
 0x324   : > { %1674 = vst [vmem:[%s455_s17] sm:$0xff] %v1672_v12 }
 0x327   : > { %v1631_v16 = vpop.f32.mrf.mxu2  ;;  %v1660_v18 = vpop.f32.mrf.mxu3 }
 0x329   : > { %v1602_v14 = vpop.f32.mrf.mxu1 }
 0x32a   : > { %v1666_v15 = vadd.f32 %v1602_v14, %v1573_v13 }
 0x32c   : > { %v1667_v17 = vadd.f32 %v1666_v15, %v1631_v16 }
 0x32e   : > { %v1668_v19 = vadd.f32 %v1667_v17, %v1660_v18 }
 0x330   : > { %v1673_v20 = vadd.f32 %v2052_v9, %v1668_v19 }
 0x332   : > { %1675 = vst [vmem:[%s455_s17 + $0x8] sm:$0xff] %v1673_v20 }
 0x333   : > { %2112 = shalt.err (!%p2109_p3)
}
 0x334   : > { %s2150_s30 = smov 128   ;;  %s2151_s17 = smov 8  }
 0x335   : > { %1998 = dma.vmem_to_hbm [thread:$0]  (%p2255_p5), %s1690_s26, 256, %s1692_s19, %s1677_s28, %s2150_s30, %s2150_s30, %s2151_s17  }
 0x336 PF: > { %p2004_p4 = scmp.ge.s32.totalorder %s2147_s24, 2  ;;  %s1706_s18 = sand.u32 1, %s2135_s21  }
 0x337   : > { %s1707_s20 = scalar_lea.sflag [#allocation3], %s1706_s18 }
 0x338   : > { %p2001_p7 = pnand %p2004_p4, %p2259_p6 }
 0x33a   : > { %p2002_p8 = pneg %p2001_p7 }
 0x33c   : > { %2130 = dma.done.wait (%p2002_p8), %s1707_s20, 256  }
 0x33d   : > { %2132 = vsyncadd (%p2002_p8), %s1707_s20, 4294967040  ;;  %s3038_s24 = sld [smem:[#allocation6_spill]]  ;;  %s3041_s21 = smov %s2139_s22 }
 0x33e   : > { %s3039_s25 = sld [smem:[#allocation5_spill]] }
 0x33f   : > { %s3040_s23 = sld [smem:[#allocation7_spill]] }
 0x343   : > { %p22_p9 = scmp.ge.s32.totalorder %s3038_s24, 4  }
 0x344   : > { %s3042_s22 = smov %s3039_s25 }
 0x345   :  { %24 = sbr.rel (!%p22_p9) target bundleno = 5 (0x5), region = 130 }
 0x34a   :  { %1713 = vsyncpa [#allocation3], 1 }
 0x34b   :  { %1715 = vsyncpa [#allocation3 + $0x1], 1 }

</bundles_post_ra>
